<compile_context>
chip_gen: v6e
topology: v6e:2x2x1
jax: 0.10.0
libtpu: 0.0.40
codegen_flags: <defaults>
</compile_context>

<pallas_src>
import functools

import jax
import jax.numpy as jnp
from jax.experimental import pallas as pl
from jax.experimental.pallas import tpu as pltpu


# --------------------------------------------------------------------------
# Fused eval kernel: phase 0 -> u = sign(W x), phase 1 -> energy = -0.5 uᵀ W u
# Grid: (phase, row-tile j, contraction-tile k), all "arbitrary".
# --------------------------------------------------------------------------
def _fused_recall_energy_kernel(x_ref, w_ref, u_ref, energy_ref,
                                u_c, mv_acc, e_acc):
    p = pl.program_id(0)              # 0 = recall, 1 = energy
    j = pl.program_id(1)              # output-row tile of W
    k = pl.program_id(2)              # contraction tile
    nj = pl.num_programs(1)
    nk = pl.num_programs(2)
    tm, tk = w_ref.shape
    row0 = pl.multiple_of(j * tm, tm)
    col0 = pl.multiple_of(k * tk, tk)

    @pl.when(k == 0)
    def _zero_matvec_acc():
        mv_acc[...] = jnp.zeros_like(mv_acc)

    @pl.when((p == 1) & (j == 0) & (k == 0))
    def _zero_energy_acc():
        e_acc[...] = jnp.zeros_like(e_acc)

    # ---- phase 0: u = sign(W @ x) -----------------------------------------
    @pl.when(p == 0)
    def _recall():
        mv_acc[...] += jnp.dot(w_ref[...], x_ref[pl.ds(col0, tk), :],
                               preferred_element_type=jnp.float32)

        @pl.when(k == nk - 1)
        def _emit_u():
            # torch.where(s >= 0, 1, -1): ties at exactly 0 go to +1
            u_c[pl.ds(row0, tm), :] = jnp.where(
                mv_acc[...] >= 0.0, 1.0, -1.0).astype(u_c.dtype)

    # ---- phase 1: energy = -0.5 * uᵀ (W u) --------------------------------
    @pl.when(p == 1)
    def _energy():
        mv_acc[...] += jnp.dot(w_ref[...], u_c[pl.ds(col0, tk), :],
                               preferred_element_type=jnp.float32)

        @pl.when(k == nk - 1)
        def _accumulate():
            u_tile = u_c[pl.ds(row0, tm), :].astype(jnp.float32)     # (tm, B)
            e_acc[...] += u_tile * mv_acc[...]                       # VPU only

            @pl.when(j == nj - 1)
            def _finalize():
                # single cross-sublane reduce, only at the very end
                energy_ref[...] = -0.5 * jnp.sum(e_acc[...], axis=0,
                                                 keepdims=True)
                u_ref[...] = u_c[...].astype(jnp.float32)


def _pick_tile(n, preferred):
    """Largest multiple of 128 that is <= preferred and divides n."""
    t = min(preferred, n)
    t -= t % 128
    t = max(t, 128)
    while n % t:
        t -= 128
    return t


def binary_hopfield_recall_batched(weights, Xb, *, tile_m=512, tile_k=512,
                                   max_resident_bytes=32 * 1024 * 1024):
    """Batched eval-mode recall.

    weights: (N, N), consumed at its own dtype (f32 = exact PyTorch path,
             bf16 = half the HBM stream).  No transpose, no prep pass.
    Xb:      (B, N) +/-1 probe patterns.
    Returns (energy (B, 1) float32, units (B, N) float32).
    """
    B, N = Xb.shape
    assert weights.shape == (N, N)
    assert N % 128 == 0, "num_units must be a multiple of 128"

    cdtype = weights.dtype
    itemsize = weights.dtype.itemsize

    # Pad the probe batch to lane width so every MXU operand / store is
    # lane-dense (extra columns are zeros -> sign(0)=+1, discarded below).
    B_pad = B if B >= 128 else 128
    x_col = Xb.T.astype(cdtype)                       # (N, B), O(N*B) prep only
    if B_pad != B:
        x_col = jnp.pad(x_col, ((0, 0), (0, B_pad - B)))

    # Whole-W residency (single DMA for both phases) when it fits VMEM;
    # otherwise stream W as (TM, TK) tiles (footprint independent of N).
    if 2 * N * N * itemsize <= max_resident_bytes:
        tm = tk = N
    else:
        tm = _pick_tile(N, tile_m)
        tk = _pick_tile(N, tile_k)
    nj, nk = N // tm, N // tk

    u_col, energy_row = pl.pallas_call(
        _fused_recall_energy_kernel,
        out_shape=(jax.ShapeDtypeStruct((N, B_pad), jnp.float32),   # u (col layout)
                   jax.ShapeDtypeStruct((1, B_pad), jnp.float32)),  # energy
        grid=(2, nj, nk),                     # (phase, row tile, contraction tile)
        in_specs=[
            pl.BlockSpec((N, B_pad), lambda p, j, k: (0, 0)),       # x: resident
            pl.BlockSpec((tm, tk), lambda p, j, k: (j, k)),         # W: natural layout
        ],
        out_specs=(
            pl.BlockSpec((N, B_pad), lambda p, j, k: (0, 0)),       # u: resident
            pl.BlockSpec((1, B_pad), lambda p, j, k: (0, 0)),       # energy: resident
        ),
        scratch_shapes=[
            pltpu.VMEM((N, B_pad), cdtype),          # u in compute dtype (exact ±1)
            pltpu.VMEM((tm, B_pad), jnp.float32),    # matvec accumulator over K
            pltpu.VMEM((tm, B_pad), jnp.float32),    # energy partial sums
        ],
        compiler_params=pltpu.CompilerParams(
            dimension_semantics=("arbitrary", "arbitrary", "arbitrary"),
            vmem_limit_bytes=48 * 1024 * 1024),
    )(x_col, weights)

    energy = energy_row[:, :B].reshape(B, 1)
    units = u_col[:, :B].T
    return energy, units


def binary_hopfield_eval(weights, X, **kwargs):
    """Module-equivalent eval forward: (energy (1,1) f32, units of X.shape)."""
    N = weights.shape[0]
    assert X.size == N, "X must contain num_units elements"
    energy, u = binary_hopfield_recall_batched(weights, X.reshape(1, N), **kwargs)
    return energy, u.reshape(X.shape)


# --------------------------------------------------------------------------
# Training-path kernel: W = (x xᵀ) / num_minima with zeroed diagonal
# (2-D tiled VPU broadcast outer product; square tiles so i == j identifies
#  the diagonal tiles)
# --------------------------------------------------------------------------
def _hopfield_train_kernel(xc_ref, xr_ref, w_ref, *, inv_num_minima):
    i = pl.program_id(0)
    j = pl.program_id(1)
    w_blk = (xc_ref[...] * xr_ref[...]) * inv_num_minima    # (TM,1)*(1,TN)

    @pl.when(i != j)
    def _off_diag():
        w_ref[...] = w_blk.astype(w_ref.dtype)

    @pl.when(i == j)
    def _on_diag():
        tm, tn = w_blk.shape
        r = jax.lax.broadcasted_iota(jnp.int32, (tm, 1), 0)
        c = jax.lax.broadcasted_iota(jnp.int32, (1, tn), 1)
        w_ref[...] = jnp.where(r == c, 0.0, w_blk).astype(w_ref.dtype)


def binary_hopfield_train(X, num_units, num_minima, *, tile=512,
                          out_dtype=jnp.float32):
    """Training-mode forward: returns W = (x xᵀ)/num_minima, zero diagonal.
    Use out_dtype=jnp.bfloat16 to halve the HBM store and feed eval directly."""
    assert num_units % 128 == 0, "num_units must be a multiple of 128"
    x = X.reshape(num_units).astype(jnp.float32)
    xc = x.reshape(num_units, 1)
    xr = x.reshape(1, num_units)

    t = _pick_tile(num_units, tile)          # square tiles (tm == tn)
    grid = (num_units // t, num_units // t)

    return pl.pallas_call(
        functools.partial(_hopfield_train_kernel,
                          inv_num_minima=1.0 / float(num_minima)),
        out_shape=jax.ShapeDtypeStruct((num_units, num_units), out_dtype),
        grid=grid,
        in_specs=[
            pl.BlockSpec((t, 1), lambda i, j: (i, 0)),
            pl.BlockSpec((1, t), lambda i, j: (0, j)),
        ],
        out_specs=pl.BlockSpec((t, t), lambda i, j: (i, j)),
        compiler_params=pltpu.CompilerParams(
            dimension_semantics=("parallel", "parallel")),
    )(xc, xr)


# --------------------------------------------------------------------------
if __name__ == "__main__":
    num_units = 256          # X must contain exactly num_units elements
    num_minima = 4

    key = jax.random.PRNGKey(0)
    k_w, k_x, k_b = jax.random.split(key, 3)

    # torch.rand(num_units, num_units) -> uniform [0, 1)
    weights = jax.random.uniform(k_w, (num_units, num_units), dtype=jnp.float32)
    # Binary (+1/-1) input pattern, shape (16, 16) -> 256 elements
    X = jnp.where(jax.random.uniform(k_x, (16, 16)) > 0.5, 1.0, -1.0
                  ).astype(jnp.float32)

    # -------- eval forward (module-equivalent, B=1, f32 W, W-resident path) --
    energy, units = binary_hopfield_eval(weights, X)
    jax.block_until_ready((energy, units))
    assert energy.shape == (1, 1) and units.shape == X.shape

    # exact-f32 reference (same math as PyTorch eval path)
    x_row = X.reshape(1, num_units)
    s_ref = x_row @ weights.T
    u_ref = jnp.where(s_ref >= 0, 1.0, -1.0)
    u_out = units.reshape(1, num_units)
    assert bool(jnp.all((u_out == u_ref) | (jnp.abs(s_ref) < 1e-2)))
    wu = u_out @ weights.T
    e_chk = -0.5 * jnp.sum(u_out * wu, axis=1, keepdims=True)
    assert bool(jnp.allclose(energy, e_chk, rtol=1e-3, atol=1.0))

    # -------- batched recall, forced streamed K-tiled path -------------------
    Xb = jnp.where(jax.random.uniform(k_b, (8, num_units)) > 0.5, 1.0, -1.0
                   ).astype(jnp.float32)
    e_b, u_b = binary_hopfield_recall_batched(
        weights, Xb, tile_m=128, tile_k=128, max_resident_bytes=0)
    jax.block_until_ready((e_b, u_b))
    s_b = Xb @ weights.T
    u_b_ref = jnp.where(s_b >= 0, 1.0, -1.0)
    assert bool(jnp.all((u_b == u_b_ref) | (jnp.abs(s_b) < 1e-2)))
    wu_b = u_b @ weights.T
    e_b_chk = -0.5 * jnp.sum(u_b * wu_b, axis=1, keepdims=True)
    assert bool(jnp.allclose(e_b, e_b_chk, rtol=1e-3, atol=1.0))

    # -------- bf16-weight path (half the HBM stream; cast once, outside) -----
    w_bf16 = weights.astype(jnp.bfloat16)
    e_bf, u_bf = binary_hopfield_recall_batched(w_bf16, Xb)
    jax.block_until_ready((e_bf, u_bf))
    s_bf = jnp.dot(Xb.astype(jnp.bfloat16), w_bf16.T,
                   preferred_element_type=jnp.float32)
    u_bf_ref = jnp.where(s_bf >= 0, 1.0, -1.0)
    assert bool(jnp.all((u_bf == u_bf_ref) | (jnp.abs(s_bf) < 1e-2)))
    wu_bf = jnp.dot(u_bf.astype(jnp.bfloat16), w_bf16.T,
                    preferred_element_type=jnp.float32)
    e_bf_chk = -0.5 * jnp.sum(u_bf * wu_bf, axis=1, keepdims=True)
    assert bool(jnp.allclose(e_bf, e_bf_chk, rtol=1e-3, atol=1.0))

    # -------- training-mode weight update -------------------------------------
    new_w = binary_hopfield_train(X, num_units, num_minima)
    jax.block_until_ready(new_w)
    x_col = X.reshape(num_units, 1)
    w_train_ref = (x_col @ x_col.T) / num_minima
    w_train_ref = w_train_ref * (1.0 - jnp.eye(num_units, dtype=jnp.float32))
    assert bool(jnp.allclose(new_w, w_train_ref, rtol=1e-6, atol=1e-6))

    # bf16 output variant (num_minima=4 is a power of two -> exact in bf16)
    new_w_bf = binary_hopfield_train(X, num_units, num_minima,
                                     out_dtype=jnp.bfloat16)
    jax.block_until_ready(new_w_bf)
    assert bool(jnp.allclose(new_w_bf.astype(jnp.float32), w_train_ref,
                             rtol=1e-6, atol=1e-6))

    print("KERNEL_OK")
</pallas_src>

<mosaic_0001>
module attributes {stable_mosaic.version = 11 : i64} {
  func.func @_fused_recall_energy_kernel(%arg0: i32, %arg1: i32, %arg2: i32, %arg3: memref<256x128xf32, #tpu.memory_space<vmem>>, %arg4: memref<256x256xf32, #tpu.memory_space<vmem>>, %arg5: memref<256x128xf32, #tpu.memory_space<vmem>>, %arg6: memref<1x128xf32, #tpu.memory_space<vmem>>, %arg7: memref<256x128xf32, #tpu.memory_space<vmem>>, %arg8: memref<256x128xf32, #tpu.memory_space<vmem>>, %arg9: memref<256x128xf32, #tpu.memory_space<vmem>>) attributes {dimension_semantics = [#tpu.dimension_semantics<arbitrary>, #tpu.dimension_semantics<arbitrary>, #tpu.dimension_semantics<arbitrary>], iteration_bounds = array<i64: 2, 1, 1>, scalar_prefetch = 0 : i64, scratch_operands = 3 : i64, tpu.core_type = #tpu.core_type<tc>, window_params = [{pipeline_mode = #tpu.pipeline_mode<synchronous>, transform_indices = @transform_0, window_bounds = array<i64: 256, 128>}, {transform_indices = @transform_1, window_bounds = array<i64: 256, 256>}, {pipeline_mode = #tpu.pipeline_mode<synchronous>, transform_indices = @transform_2, window_bounds = array<i64: 256, 128>}, {pipeline_mode = #tpu.pipeline_mode<synchronous>, transform_indices = @transform_3, window_bounds = array<i64: 1, 128>}]} {
    %c256_i32 = arith.constant 256 : i32
    %0 = arith.muli %arg1, %c256_i32 : i32
    %1 = tpu.assume_multiple %0, 256 : i32
    %c256_i32_0 = arith.constant 256 : i32
    %2 = arith.muli %arg2, %c256_i32_0 : i32
    %3 = tpu.assume_multiple %2, 256 : i32
    %c0_i32 = arith.constant 0 : i32
    %4 = arith.cmpi eq, %arg2, %c0_i32 : i32
    %5 = arith.extui %4 : i1 to i32
    %c0_i32_1 = arith.constant 0 : i32
    %6 = arith.cmpi ne, %5, %c0_i32_1 : i32
    scf.if %6 {
      %cst = arith.constant 0.000000e+00 : f32
      %20 = vector.broadcast %cst : f32 to vector<256x128xf32>
      %c0 = arith.constant 0 : index
      %c0_9 = arith.constant 0 : index
      %21 = vector.load %arg8[%c0, %c0_9] : memref<256x128xf32, #tpu.memory_space<vmem>>, vector<256x128xf32>
      tpu.vector_store %arg8[%c0, %c0_9], %20 {strides = array<i32>} : memref<256x128xf32, #tpu.memory_space<vmem>>, vector<256x128xf32>,
    } else {
    }
    %c1_i32 = arith.constant 1 : i32
    %7 = arith.cmpi eq, %arg0, %c1_i32 : i32
    %c0_i32_2 = arith.constant 0 : i32
    %8 = arith.cmpi eq, %arg1, %c0_i32_2 : i32
    %9 = arith.andi %7, %8 : i1
    %c0_i32_3 = arith.constant 0 : i32
    %10 = arith.cmpi eq, %arg2, %c0_i32_3 : i32
    %11 = arith.andi %9, %10 : i1
    %12 = arith.extui %11 : i1 to i32
    %c0_i32_4 = arith.constant 0 : i32
    %13 = arith.cmpi ne, %12, %c0_i32_4 : i32
    scf.if %13 {
      %cst = arith.constant 0.000000e+00 : f32
      %20 = vector.broadcast %cst : f32 to vector<256x128xf32>
      %c0 = arith.constant 0 : index
      %c0_9 = arith.constant 0 : index
      %21 = vector.load %arg9[%c0, %c0_9] : memref<256x128xf32, #tpu.memory_space<vmem>>, vector<256x128xf32>
      tpu.vector_store %arg9[%c0, %c0_9], %20 {strides = array<i32>} : memref<256x128xf32, #tpu.memory_space<vmem>>, vector<256x128xf32>,
    } else {
    }
    %c0_i32_5 = arith.constant 0 : i32
    %14 = arith.cmpi eq, %arg0, %c0_i32_5 : i32
    %15 = arith.extui %14 : i1 to i32
    %c0_i32_6 = arith.constant 0 : i32
    %16 = arith.cmpi ne, %15, %c0_i32_6 : i32
    scf.if %16 {
      %c0 = arith.constant 0 : index
      %c0_9 = arith.constant 0 : index
      %20 = vector.load %arg8[%c0, %c0_9] : memref<256x128xf32, #tpu.memory_space<vmem>>, vector<256x128xf32>
      %c0_10 = arith.constant 0 : index
      %c0_11 = arith.constant 0 : index
      %21 = vector.load %arg4[%c0_10, %c0_11] : memref<256x256xf32, #tpu.memory_space<vmem>>, vector<256x256xf32>
      %22 = arith.index_cast %3 : i32 to index
      %c0_12 = arith.constant 0 : index
      %23 = vector.load %arg3[%22, %c0_12] : memref<256x128xf32, #tpu.memory_space<vmem>>, vector<256x128xf32>
      %cst = arith.constant dense<0.000000e+00> : vector<256x128xf32>
      %24 = tpu.matmul %21, %23, %cst {dimension_numbers = #tpu.dot_dimension_numbers<[1], [0], [0], [1], [0, 0, 1, 1], [], []>} : vector<256x256xf32>, vector<256x128xf32>, vector<256x128xf32> -> vector<256x128xf32>
      %25 = arith.addf %20, %24 : vector<256x128xf32>
      %c0_13 = arith.constant 0 : index
      %c0_14 = arith.constant 0 : index
      %26 = vector.load %arg8[%c0_13, %c0_14] : memref<256x128xf32, #tpu.memory_space<vmem>>, vector<256x128xf32>
      tpu.vector_store %arg8[%c0_13, %c0_14], %25 {strides = array<i32>} : memref<256x128xf32, #tpu.memory_space<vmem>>, vector<256x128xf32>,
      %c0_i32_15 = arith.constant 0 : i32
      %27 = arith.cmpi eq, %arg2, %c0_i32_15 : i32
      %28 = arith.extui %27 : i1 to i32
      %c0_i32_16 = arith.constant 0 : i32
      %29 = arith.cmpi ne, %28, %c0_i32_16 : i32
      scf.if %29 {
        %c0_17 = arith.constant 0 : index
        %c0_18 = arith.constant 0 : index
        %30 = vector.load %arg8[%c0_17, %c0_18] : memref<256x128xf32, #tpu.memory_space<vmem>>, vector<256x128xf32>
        %cst_19 = arith.constant 0.000000e+00 : f32
        %31 = vector.broadcast %cst_19 : f32 to vector<256x128xf32>
        %32 = arith.cmpf oge, %30, %31 : vector<256x128xf32>
        %cst_20 = arith.constant 1.000000e+00 : f32
        %cst_21 = arith.constant -1.000000e+00 : f32
        %33 = vector.broadcast %cst_20 : f32 to vector<256x128xf32>
        %34 = vector.broadcast %cst_21 : f32 to vector<256x128xf32>
        %35 = arith.select %32, %33, %34 : vector<256x128xi1>, vector<256x128xf32>
        %36 = arith.index_cast %1 : i32 to index
        %c0_22 = arith.constant 0 : index
        %37 = vector.load %arg7[%36, %c0_22] : memref<256x128xf32, #tpu.memory_space<vmem>>, vector<256x128xf32>
        tpu.vector_store %arg7[%36, %c0_22], %35 {strides = array<i32>} : memref<256x128xf32, #tpu.memory_space<vmem>>, vector<256x128xf32>,
      } else {
      }
    } else {
    }
    %c1_i32_7 = arith.constant 1 : i32
    %17 = arith.cmpi eq, %arg0, %c1_i32_7 : i32
    %18 = arith.extui %17 : i1 to i32
    %c0_i32_8 = arith.constant 0 : i32
    %19 = arith.cmpi ne, %18, %c0_i32_8 : i32
    scf.if %19 {
      %c0 = arith.constant 0 : index
      %c0_9 = arith.constant 0 : index
      %20 = vector.load %arg8[%c0, %c0_9] : memref<256x128xf32, #tpu.memory_space<vmem>>, vector<256x128xf32>
      %c0_10 = arith.constant 0 : index
      %c0_11 = arith.constant 0 : index
      %21 = vector.load %arg4[%c0_10, %c0_11] : memref<256x256xf32, #tpu.memory_space<vmem>>, vector<256x256xf32>
      %22 = arith.index_cast %3 : i32 to index
      %c0_12 = arith.constant 0 : index
      %23 = vector.load %arg7[%22, %c0_12] : memref<256x128xf32, #tpu.memory_space<vmem>>, vector<256x128xf32>
      %cst = arith.constant dense<0.000000e+00> : vector<256x128xf32>
      %24 = tpu.matmul %21, %23, %cst {dimension_numbers = #tpu.dot_dimension_numbers<[1], [0], [0], [1], [0, 0, 1, 1], [], []>} : vector<256x256xf32>, vector<256x128xf32>, vector<256x128xf32> -> vector<256x128xf32>
      %25 = arith.addf %20, %24 : vector<256x128xf32>
      %c0_13 = arith.constant 0 : index
      %c0_14 = arith.constant 0 : index
      %26 = vector.load %arg8[%c0_13, %c0_14] : memref<256x128xf32, #tpu.memory_space<vmem>>, vector<256x128xf32>
      tpu.vector_store %arg8[%c0_13, %c0_14], %25 {strides = array<i32>} : memref<256x128xf32, #tpu.memory_space<vmem>>, vector<256x128xf32>,
      %c0_i32_15 = arith.constant 0 : i32
      %27 = arith.cmpi eq, %arg2, %c0_i32_15 : i32
      %28 = arith.extui %27 : i1 to i32
      %c0_i32_16 = arith.constant 0 : i32
      %29 = arith.cmpi ne, %28, %c0_i32_16 : i32
      scf.if %29 {
        %30 = arith.index_cast %1 : i32 to index
        %c0_17 = arith.constant 0 : index
        %31 = vector.load %arg7[%30, %c0_17] : memref<256x128xf32, #tpu.memory_space<vmem>>, vector<256x128xf32>
        %c0_18 = arith.constant 0 : index
        %c0_19 = arith.constant 0 : index
        %32 = vector.load %arg9[%c0_18, %c0_19] : memref<256x128xf32, #tpu.memory_space<vmem>>, vector<256x128xf32>
        %c0_20 = arith.constant 0 : index
        %c0_21 = arith.constant 0 : index
        %33 = vector.load %arg8[%c0_20, %c0_21] : memref<256x128xf32, #tpu.memory_space<vmem>>, vector<256x128xf32>
        %34 = arith.mulf %31, %33 : vector<256x128xf32>
        %35 = arith.addf %32, %34 : vector<256x128xf32>
        %c0_22 = arith.constant 0 : index
        %c0_23 = arith.constant 0 : index
        %36 = vector.load %arg9[%c0_22, %c0_23] : memref<256x128xf32, #tpu.memory_space<vmem>>, vector<256x128xf32>
        tpu.vector_store %arg9[%c0_22, %c0_23], %35 {strides = array<i32>} : memref<256x128xf32, #tpu.memory_space<vmem>>, vector<256x128xf32>,
        %c0_i32_24 = arith.constant 0 : i32
        %37 = arith.cmpi eq, %arg1, %c0_i32_24 : i32
        %38 = arith.extui %37 : i1 to i32
        %c0_i32_25 = arith.constant 0 : i32
        %39 = arith.cmpi ne, %38, %c0_i32_25 : i32
        scf.if %39 {
          %c0_26 = arith.constant 0 : index
          %c0_27 = arith.constant 0 : index
          %40 = vector.load %arg9[%c0_26, %c0_27] : memref<256x128xf32, #tpu.memory_space<vmem>>, vector<256x128xf32>
          %cst_28 = arith.constant dense<0.000000e+00> : vector<128xf32>
          %41 = vector.multi_reduction <add>, %40, %cst_28 [0] : vector<256x128xf32> to vector<128xf32>
          %42 = vector.shape_cast %41 : vector<128xf32> to vector<1x128xf32>
          %cst_29 = arith.constant -5.000000e-01 : f32
          %43 = vector.broadcast %cst_29 : f32 to vector<1x128xf32>
          %44 = arith.mulf %43, %42 : vector<1x128xf32>
          %c0_30 = arith.constant 0 : index
          %c0_31 = arith.constant 0 : index
          %45 = vector.load %arg6[%c0_30, %c0_31] : memref<1x128xf32, #tpu.memory_space<vmem>>, vector<1x128xf32>
          tpu.vector_store %arg6[%c0_30, %c0_31], %44 {strides = array<i32>} : memref<1x128xf32, #tpu.memory_space<vmem>>, vector<1x128xf32>,
          %c0_32 = arith.constant 0 : index
          %c0_33 = arith.constant 0 : index
          %46 = vector.load %arg7[%c0_32, %c0_33] : memref<256x128xf32, #tpu.memory_space<vmem>>, vector<256x128xf32>
          %c0_34 = arith.constant 0 : index
          %c0_35 = arith.constant 0 : index
          %47 = vector.load %arg5[%c0_34, %c0_35] : memref<256x128xf32, #tpu.memory_space<vmem>>, vector<256x128xf32>
          tpu.vector_store %arg5[%c0_34, %c0_35], %46 {strides = array<i32>} : memref<256x128xf32, #tpu.memory_space<vmem>>, vector<256x128xf32>,
        } else {
        }
      } else {
      }
    } else {
    }
    return
  }
  func.func @transform_0(%arg0: i32, %arg1: i32, %arg2: i32) -> (i32, i32) {
    %c0_i32 = arith.constant 0 : i32
    %c0_i32_0 = arith.constant 0 : i32
    %c0_i32_1 = arith.constant 0 : i32
    return %c0_i32, %c0_i32_0 : i32, i32
  }
  func.func @transform_1(%arg0: i32, %arg1: i32, %arg2: i32) -> (i32, i32) {
    %c0_i32 = arith.constant 0 : i32
    return %arg1, %arg2 : i32, i32
  }
  func.func @transform_2(%arg0: i32, %arg1: i32, %arg2: i32) -> (i32, i32) {
    %c0_i32 = arith.constant 0 : i32
    %c0_i32_0 = arith.constant 0 : i32
    %c0_i32_1 = arith.constant 0 : i32
    return %c0_i32, %c0_i32_0 : i32, i32
  }
  func.func @transform_3(%arg0: i32, %arg1: i32, %arg2: i32) -> (i32, i32) {
    %c0_i32 = arith.constant 0 : i32
    %c0_i32_0 = arith.constant 0 : i32
    %c0_i32_1 = arith.constant 0 : i32
    return %c0_i32, %c0_i32_0 : i32, i32
  }
}

</mosaic_0001>

<bundles_post_ra>
// kernel: tpu_custom_call.1
= control target key start
LH: loop header
LB: loop body
LE: loop exit
PB: predicated region body
PF: predicated region fallthrough
CT: control target
= control target key end

     0   :  { %9 = vsyncpa [#allocation6], 0  ;;  %s2583_s0 = inlined_call_operand.hbm [shape: f32[256,128], index: 0, kind: input, shape index: {}]   ;;  %s2584_s1 = inlined_call_operand.hbm [shape: f32[256,256], index: 1, kind: input, shape index: {}]   ;;  %s2585_s2 = inlined_call_operand.hbm [shape: f32[256,128], index: 2, kind: output, shape index: {0}]   ;;  %s2586_s3 = inlined_call_operand.hbm [shape: f32[1,128], index: 3, kind: output, shape index: {1}]  }
   0x1   :  { %10 = vsyncpa [#allocation9], 0 }
   0x2   :  { %11 = vsyncpa [#allocation7], 0 }
   0x3   :  { %12 = vsyncpa [#allocation12], 0  ;;  %s2087_s12 = smov 0   ;;  %s2089_s13 = smov 0  }
   0x4   :  { %s2091_s14 = smov 0  }
   0x5 LB: > { %s1692_s15 = sadd.s32 4294967295, %s2050_s14   ;;  %s37_s16 = sadd.s32 1, %s2046_s13  ;;  %s2050_s14 = sphi %s2091_s14, %s18_s14   ;;  %s2046_s13 = sphi %s2089_s13, %s2592_s13   ;;  %s2042_s12 = sphi %s2087_s12, %s2591_s12  }
   0x6   : > { %p39_p0 = scmp.ge.s32.totalorder %s37_s16, 2  ;;  %p1693_p1 = scmp.ge.s32.totalorder %s2050_s14, 1 }
   0x7   : > { %p133_p2 = scmp.lt.s32.totalorder %s2050_s14, 3  ;;  %p2114_p4 = scmp.eq.s32.totalorder %s1692_s15, 0 }
   0x8   : > { %s2594_s16 = smov (%p39_p0, %s37_s16), 0  ;;  %s2052_s19 = smov [#allocation5]  }
   0x9   : > { %p2108_p3 = pnand %p1693_p1, %p133_p2  ;;  %s145_s20 = sshll.u32 %s2052_s19, 4  ;;  %s146_s20 = int_to_ptr.vmem [resolvable:$true] %s145_s20 }
   0xa   : > { %s2053_s22 = smov [#allocation8]   ;;  %s1923_s24 = scalar_lea.vmem %s146_s20, 4096 }
   0xb   : > { %p1855_p5 = pneg %p2108_p3  ;;  %s164_s23 = sshll.u32 %s2053_s22, 4  ;;  %s165_s23 = int_to_ptr.vmem [resolvable:$true] %s164_s23 }
   0xc   : > { %p1924_p8 = scmp.ne.s32.totalorder %s146_s20, %s1923_s24  ;;  %p1931_p11 = scmp.lt.s32.totalorder %s146_s20, %s146_s20 }
   0xd   : > { %p2122_p6 = pnand %p2114_p4, %p1855_p5  ;;  %p1932_p12 = scmp.lt.s32.totalorder %s1923_s24, %s1923_s24 }
   0xf   : > { %p1914_p7 = pneg %p2122_p6  ;;  %p1933_p13 = por %p1932_p12, %p1931_p11 }
  0x11   : > { %p1926_p9 = pnand %p1924_p8, %p1914_p7 }
  0x13   : > { %p1927_p10 = pneg %p1926_p9 }
  0x15   : > { %p1934_p0 = pnand %p1933_p13, %p1927_p10 }
  0x17   : > { %1937 = shalt.err (!%p1934_p0)
}
  0x18   : > { %s2054_s25 = smov 128   ;;  %s2055_s26 = smov 8  }
  0x19   : > { %1858 = dma.hbm_to_vmem [thread:$0]  (!%p2122_p6), %s2583_s0, 4096, %s146_s20, [#allocation6], %s2054_s25, %s2054_s25, %s2055_s26  }
  0x1a   : > { %s1949_s29 = scalar_lea.vmem %s165_s23, 8192  ;;  %p1957_p8 = scmp.lt.s32.totalorder %s165_s23, %s165_s23 }
  0x1b   : > { %p1950_p1 = scmp.ne.s32.totalorder %s165_s23, %s1949_s29  ;;  %p1958_p9 = scmp.lt.s32.totalorder %s1949_s29, %s1949_s29 }
  0x1d   : > { %p1952_p2 = pnand %p1950_p1, %p1914_p7  ;;  %p1959_p11 = por %p1958_p9, %p1957_p8 }
  0x1f   : > { %p1953_p5 = pneg %p1952_p2 }
  0x21   : > { %p1960_p10 = pnand %p1959_p11, %p1953_p5 }
  0x23   : > { %1963 = shalt.err (!%p1960_p10)
}
  0x24   : > { %s2056_s30 = smov 256   ;;  %s2057_s4 = smov 16  }
  0x25   : > { %1861 = dma.hbm_to_vmem [thread:$0]  (!%p2122_p6), %s2584_s1, 8192, %s165_s23, [#allocation9], %s2056_s30, %s2056_s30, %s2057_s4  }
  0x26   : > { %180 = sbr.rel (%p2108_p3) target bundleno = 821 (0x335), region = 28 }
  0x2b   : > { %2025 = dma.done.wait (%p2114_p4), [#allocation6], 4096  }
  0x2c   : > { %2027 = vsyncadd (%p2114_p4), [#allocation6], 4294963200 }
  0x2d   : > { %2029 = dma.done.wait (%p2114_p4), [#allocation9], 8192  }
  0x2e   : > { %2031 = vsyncadd (%p2114_p4), [#allocation9], 4294959104  ;;  %p238_p7 = scmp.eq.s32.totalorder %s2042_s12, 1  ;;  %v2058_v0 = vmov 0.0  }
  0x2f   : > { %206 = vst [vmem:[#allocation3 + $0x80] sm:$0xff] %v2058_v0  ;;  %207 = vst [vmem:[#allocation3 + $0xc8] sm:$0xff] %v2058_v0  ;;  %v2059_v1 = vmov (%p238_p7), 0.0  }
  0x30   : > { %208 = vst [vmem:[#allocation3 + $0xe8] sm:$0xff] %v2058_v0  ;;  %209 = vst [vmem:[#allocation3 + $0x78] sm:$0xff] %v2058_v0 }
  0x31   : > { %210 = vst [vmem:[#allocation3 + $0x8] sm:$0xff] %v2058_v0  ;;  %211 = vst [vmem:[#allocation3 + $0x90] sm:$0xff] %v2058_v0 }
  0x32   : > { %212 = vst [vmem:[#allocation3 + $0x58] sm:$0xff] %v2058_v0  ;;  %213 = vst [vmem:[#allocation3 + $0xa8] sm:$0xff] %v2058_v0 }
  0x33   : > { %214 = vst [vmem:[#allocation3 + $0xd0] sm:$0xff] %v2058_v0  ;;  %215 = vst [vmem:[#allocation3 + $0xb0] sm:$0xff] %v2058_v0 }
  0x34   : > { %216 = vst [vmem:[#allocation3 + $0x38] sm:$0xff] %v2058_v0  ;;  %217 = vst [vmem:[#allocation3 + $0x40] sm:$0xff] %v2058_v0 }
  0x35   : > { %218 = vst [vmem:[#allocation3 + $0xe0] sm:$0xff] %v2058_v0  ;;  %219 = vst [vmem:[#allocation3 + $0x60] sm:$0xff] %v2058_v0 }
  0x36   : > { %220 = vst [vmem:[#allocation3 + $0x18] sm:$0xff] %v2058_v0  ;;  %221 = vst [vmem:[#allocation3 + $0x68] sm:$0xff] %v2058_v0 }
  0x37   : > { %222 = vst [vmem:[#allocation3 + $0x10] sm:$0xff] %v2058_v0  ;;  %223 = vst [vmem:[#allocation3 + $0x70] sm:$0xff] %v2058_v0 }
  0x38   : > { %224 = vst [vmem:[#allocation3 + $0x50] sm:$0xff] %v2058_v0  ;;  %225 = vst [vmem:[#allocation3 + $0xa0] sm:$0xff] %v2058_v0 }
  0x39   : > { %226 = vst [vmem:[#allocation3 + $0xd8] sm:$0xff] %v2058_v0  ;;  %227 = vst [vmem:[#allocation3 + $0x30] sm:$0xff] %v2058_v0 }
  0x3a   : > { %228 = vst [vmem:[#allocation3 + $0x20] sm:$0xff] %v2058_v0  ;;  %229 = vst [vmem:[#allocation3 + $0xf0] sm:$0xff] %v2058_v0  ;;  %245 = sbr.rel (!%p238_p7) target bundleno = 79 (0x4f), region = 44 }
  0x3b   : > { %230 = vst [vmem:[#allocation3 + $0x88] sm:$0xff] %v2058_v0  ;;  %231 = vst [vmem:[#allocation3 + $0x48] sm:$0xff] %v2058_v0 }
  0x3c   : > { %232 = vst [vmem:[#allocation3 + $0xf8] sm:$0xff] %v2058_v0  ;;  %233 = vst [vmem:[#allocation3 + $0xc0] sm:$0xff] %v2058_v0 }
  0x3d   : > { %234 = vst [vmem:[#allocation3 + $0xb8] sm:$0xff] %v2058_v0  ;;  %235 = vst [vmem:[#allocation3] sm:$0xff] %v2058_v0 }
  0x3e   : > { %236 = vst [vmem:[#allocation3 + $0x28] sm:$0xff] %v2058_v0  ;;  %237 = vst [vmem:[#allocation3 + $0x98] sm:$0xff] %v2058_v0 }
  0x3f   : > { %246 = vst [vmem:[#allocation4 + $0xb0] sm:$0xff] %v2059_v1  ;;  %247 = vst [vmem:[#allocation4 + $0xb8] sm:$0xff] %v2059_v1 }
  0x40   : > { %248 = vst [vmem:[#allocation4 + $0xc0] sm:$0xff] %v2059_v1  ;;  %249 = vst [vmem:[#allocation4 + $0x10] sm:$0xff] %v2059_v1 }
  0x41   : > { %250 = vst [vmem:[#allocation4 + $0x28] sm:$0xff] %v2059_v1  ;;  %251 = vst [vmem:[#allocation4 + $0x30] sm:$0xff] %v2059_v1 }
  0x42   : > { %252 = vst [vmem:[#allocation4 + $0xd0] sm:$0xff] %v2059_v1  ;;  %253 = vst [vmem:[#allocation4 + $0x68] sm:$0xff] %v2059_v1 }
  0x43   : > { %254 = vst [vmem:[#allocation4 + $0x58] sm:$0xff] %v2059_v1  ;;  %255 = vst [vmem:[#allocation4] sm:$0xff] %v2059_v1 }
  0x44   : > { %256 = vst [vmem:[#allocation4 + $0x48] sm:$0xff] %v2059_v1  ;;  %257 = vst [vmem:[#allocation4 + $0x40] sm:$0xff] %v2059_v1 }
  0x45   : > { %258 = vst [vmem:[#allocation4 + $0x78] sm:$0xff] %v2059_v1  ;;  %259 = vst [vmem:[#allocation4 + $0xd8] sm:$0xff] %v2059_v1 }
  0x46   : > { %260 = vst [vmem:[#allocation4 + $0xe0] sm:$0xff] %v2059_v1  ;;  %261 = vst [vmem:[#allocation4 + $0x80] sm:$0xff] %v2059_v1 }
  0x47   : > { %262 = vst [vmem:[#allocation4 + $0xa0] sm:$0xff] %v2059_v1  ;;  %263 = vst [vmem:[#allocation4 + $0x18] sm:$0xff] %v2059_v1 }
  0x48   : > { %264 = vst [vmem:[#allocation4 + $0xf8] sm:$0xff] %v2059_v1  ;;  %265 = vst [vmem:[#allocation4 + $0xe8] sm:$0xff] %v2059_v1 }
  0x49   : > { %266 = vst [vmem:[#allocation4 + $0x90] sm:$0xff] %v2059_v1  ;;  %267 = vst [vmem:[#allocation4 + $0x20] sm:$0xff] %v2059_v1 }
  0x4a   : > { %268 = vst [vmem:[#allocation4 + $0x38] sm:$0xff] %v2059_v1  ;;  %269 = vst [vmem:[#allocation4 + $0x70] sm:$0xff] %v2059_v1 }
  0x4b   : > { %270 = vst [vmem:[#allocation4 + $0xa8] sm:$0xff] %v2059_v1  ;;  %271 = vst [vmem:[#allocation4 + $0xf0] sm:$0xff] %v2059_v1 }
  0x4c   : > { %272 = vst [vmem:[#allocation4 + $0x50] sm:$0xff] %v2059_v1  ;;  %273 = vst [vmem:[#allocation4 + $0x88] sm:$0xff] %v2059_v1 }
  0x4d   : > { %274 = vst [vmem:[#allocation4 + $0xc8] sm:$0xff] %v2059_v1  ;;  %275 = vst [vmem:[#allocation4 + $0x98] sm:$0xff] %v2059_v1 }
  0x4e   : > { %276 = vst [vmem:[#allocation4 + $0x60] sm:$0xff] %v2059_v1  ;;  %277 = vst [vmem:[#allocation4 + $0x8] sm:$0xff] %v2059_v1 }
  0x4f PF: > { %p1701_p3 = scmp.ne.s32.totalorder %s2042_s12, 0 }
  0x51   : > { %281 = sbr.rel (%p1701_p3) target bundleno = 410 (0x19a), region = 48 }
  0x56   : > { %v394_v2 = vld [vmem:[#allocation5 + $0x78] sm:$0xff]  ;;  %v2060_v3 = vmov 0.0   ;;  %v393_v4 = vld [vmem:[#allocation5 + $0x70] sm:$0xff]  ;;  %v392_v5 = vld [vmem:[#allocation5 + $0x68] sm:$0xff] }
  0x57   : > { %411 = vmatprep.subr.mxu0 %v2060_v3  ;;  %1711 = vmatprep.subr.mxu1 %v2060_v3  ;;  %v391_v6 = vld [vmem:[#allocation5 + $0x60] sm:$0xff]  ;;  %v390_v7 = vld [vmem:[#allocation5 + $0x58] sm:$0xff]  ;;  %v389_v8 = vld [vmem:[#allocation5 + $0x50] sm:$0xff] }
  0x58   : > { %412 = vmatpush1.msra.mxu0 %v394_v2  ;;  %1743 = vmatpush1.msra.mxu1 %v394_v2  ;;  %v388_v9 = vld [vmem:[#allocation5 + $0x48] sm:$0xff]  ;;  %v387_v10 = vld [vmem:[#allocation5 + $0x40] sm:$0xff]  ;;  %v386_v11 = vld [vmem:[#allocation5 + $0x38] sm:$0xff] }
  0x59   : > { %413 = vmatprep.subr.mxu0 %v2060_v3  ;;  %1712 = vmatprep.subr.mxu1 %v2060_v3  ;;  %v385_v12 = vld [vmem:[#allocation5 + $0x30] sm:$0xff]  ;;  %v384_v13 = vld [vmem:[#allocation5 + $0x28] sm:$0xff]  ;;  %v383_v14 = vld [vmem:[#allocation5 + $0x20] sm:$0xff] }
  0x5a   : > { %414 = vmatpush1.msra.mxu0 %v393_v4  ;;  %1744 = vmatpush1.msra.mxu1 %v393_v4  ;;  %v382_v15 = vld [vmem:[#allocation5 + $0x18] sm:$0xff]  ;;  %v381_v16 = vld [vmem:[#allocation5 + $0x10] sm:$0xff]  ;;  %v380_v17 = vld [vmem:[#allocation5 + $0x8] sm:$0xff] }
  0x5b   : > { %415 = vmatprep.subr.mxu0 %v2060_v3  ;;  %1713 = vmatprep.subr.mxu1 %v2060_v3  ;;  %v379_v18 = vld [vmem:[#allocation5] sm:$0xff]  ;;  %v410_v19 = vld [vmem:[#allocation5 + $0xf8] sm:$0xff]  ;;  %v409_v20 = vld [vmem:[#allocation5 + $0xf0] sm:$0xff] }
  0x5c   : > { %416 = vmatpush1.msra.mxu0 %v392_v5  ;;  %1745 = vmatpush1.msra.mxu1 %v392_v5  ;;  %v408_v21 = vld [vmem:[#allocation5 + $0xe8] sm:$0xff]  ;;  %v407_v22 = vld [vmem:[#allocation5 + $0xe0] sm:$0xff]  ;;  %v406_v23 = vld [vmem:[#allocation5 + $0xd8] sm:$0xff] }
  0x5d   : > { %417 = vmatprep.subr.mxu0 %v2060_v3  ;;  %1714 = vmatprep.subr.mxu1 %v2060_v3  ;;  %v405_v24 = vld [vmem:[#allocation5 + $0xd0] sm:$0xff]  ;;  %v404_v25 = vld [vmem:[#allocation5 + $0xc8] sm:$0xff]  ;;  %v403_v26 = vld [vmem:[#allocation5 + $0xc0] sm:$0xff] }
  0x5e   : > { %418 = vmatpush1.msra.mxu0 %v391_v6  ;;  %1746 = vmatpush1.msra.mxu1 %v391_v6  ;;  %v402_v27 = vld [vmem:[#allocation5 + $0xb8] sm:$0xff]  ;;  %v401_v28 = vld [vmem:[#allocation5 + $0xb0] sm:$0xff]  ;;  %v400_v29 = vld [vmem:[#allocation5 + $0xa8] sm:$0xff] }
  0x5f   : > { %419 = vmatprep.subr.mxu0 %v2060_v3  ;;  %1715 = vmatprep.subr.mxu1 %v2060_v3  ;;  %v399_v30 = vld [vmem:[#allocation5 + $0xa0] sm:$0xff]  ;;  %v398_v31 = vld [vmem:[#allocation5 + $0x98] sm:$0xff]  ;;  %v397_v32 = vld [vmem:[#allocation5 + $0x90] sm:$0xff] }
  0x60   : > { %420 = vmatpush1.msra.mxu0 %v390_v7  ;;  %1747 = vmatpush1.msra.mxu1 %v390_v7  ;;  %v396_v33 = vld [vmem:[#allocation5 + $0x88] sm:$0xff]  ;;  %v395_v34 = vld [vmem:[#allocation5 + $0x80] sm:$0xff]  ;;  %v317_v39 = vld [vmem:[#allocation8 + $0x18] sm:$0xff] }
  0x61   : > { %421 = vmatprep.subr.mxu0 %v2060_v3  ;;  %1716 = vmatprep.subr.mxu1 %v2060_v3  ;;  %v315_v35 = vld [vmem:[#allocation8 + $0x8] sm:$0xff]  ;;  %v314_v37 = vld [vmem:[#allocation8] sm:$0xff]  ;;  %v349_v40 = vld [vmem:[#allocation8 + $0x118] sm:$0xff] }
  0x62   : > { %422 = vmatpush1.msra.mxu0 %v389_v8  ;;  %1748 = vmatpush1.msra.mxu1 %v389_v8  ;;  %v347_v36 = vld [vmem:[#allocation8 + $0x108] sm:$0xff]  ;;  %v346_v38 = vld [vmem:[#allocation8 + $0x100] sm:$0xff]  ;;  %v316_v41 = vld [vmem:[#allocation8 + $0x10] sm:$0xff] }
  0x63   : > { %423 = vmatprep.subr.mxu0 %v2060_v3  ;;  %1717 = vmatprep.subr.mxu1 %v2060_v3  ;;  %v348_v42 = vld [vmem:[#allocation8 + $0x110] sm:$0xff]  ;;  %v319_v43 = vld [vmem:[#allocation8 + $0x28] sm:$0xff]  ;;  %v318_v45 = vld [vmem:[#allocation8 + $0x20] sm:$0xff] }
  0x64   : > { %424 = vmatpush1.msra.mxu0 %v388_v9  ;;  %1749 = vmatpush1.msra.mxu1 %v388_v9  ;;  %v351_v44 = vld [vmem:[#allocation8 + $0x128] sm:$0xff]  ;;  %v350_v46 = vld [vmem:[#allocation8 + $0x120] sm:$0xff]  ;;  %v321_v47 = vld [vmem:[#allocation8 + $0x38] sm:$0xff] }
  0x65   : > { %425 = vmatprep.subr.mxu0 %v2060_v3  ;;  %1718 = vmatprep.subr.mxu1 %v2060_v3  ;;  %v353_v48 = vld [vmem:[#allocation8 + $0x138] sm:$0xff]  ;;  %v320_v49 = vld [vmem:[#allocation8 + $0x30] sm:$0xff]  ;;  %v323_v51 = vld [vmem:[#allocation8 + $0x48] sm:$0xff] }
  0x66   : > { %426 = vmatpush1.msra.mxu0 %v387_v10  ;;  %1750 = vmatpush1.msra.mxu1 %v387_v10  ;;  %v352_v50 = vld [vmem:[#allocation8 + $0x130] sm:$0xff]  ;;  %v355_v52 = vld [vmem:[#allocation8 + $0x148] sm:$0xff]  ;;  %v322_v53 = vld [vmem:[#allocation8 + $0x40] sm:$0xff] }
  0x67   : > { %427 = vmatprep.subr.mxu0 %v2060_v3  ;;  %1719 = vmatprep.subr.mxu1 %v2060_v3  ;;  %v354_v54 = vld [vmem:[#allocation8 + $0x140] sm:$0xff]  ;;  %v325_v55 = vld [vmem:[#allocation8 + $0x58] sm:$0xff]  ;;  %v324_v57 = vld [vmem:[#allocation8 + $0x50] sm:$0xff] }
  0x68   : > { %428 = vmatpush1.msra.mxu0 %v386_v11  ;;  %1751 = vmatpush1.msra.mxu1 %v386_v11  ;;  %v357_v56 = vld [vmem:[#allocation8 + $0x158] sm:$0xff]  ;;  %v356_v58 = vld [vmem:[#allocation8 + $0x150] sm:$0xff]  ;;  %v327_v59 = vld [vmem:[#allocation8 + $0x68] sm:$0xff] }
  0x69   : > { %429 = vmatprep.subr.mxu0 %v2060_v3  ;;  %1720 = vmatprep.subr.mxu1 %v2060_v3  ;;  %v359_v60 = vld [vmem:[#allocation8 + $0x168] sm:$0xff]  ;;  %v326_v61 = vld [vmem:[#allocation8 + $0x60] sm:$0xff]  ;;  %v329_v63 = vld [vmem:[#allocation8 + $0x78] sm:$0xff] }
  0x6a   : > { %430 = vmatpush1.msra.mxu0 %v385_v12  ;;  %1752 = vmatpush1.msra.mxu1 %v385_v12  ;;  %v358_v62 = vld [vmem:[#allocation8 + $0x160] sm:$0xff]  ;;  %v361_v0 = vld [vmem:[#allocation8 + $0x178] sm:$0xff]  ;;  %v328_v1 = vld [vmem:[#allocation8 + $0x70] sm:$0xff] }
  0x6b   : > { %431 = vmatprep.subr.mxu0 %v2060_v3  ;;  %1721 = vmatprep.subr.mxu1 %v2060_v3  ;;  %v360_v2 = vld [vmem:[#allocation8 + $0x170] sm:$0xff]  ;;  %v363_v4 = vld [vmem:[#allocation8 + $0x188] sm:$0xff]  ;;  %v330_v5 = vld [vmem:[#allocation8 + $0x80] sm:$0xff] }
  0x6c   : > { %432 = vmatpush1.msra.mxu0 %v384_v13  ;;  %1753 = vmatpush1.msra.mxu1 %v384_v13  ;;  %v362_v6 = vld [vmem:[#allocation8 + $0x180] sm:$0xff]  ;;  %v333_v7 = vld [vmem:[#allocation8 + $0x98] sm:$0xff]  ;;  %v332_v9 = vld [vmem:[#allocation8 + $0x90] sm:$0xff] }
  0x6d   : > { %433 = vmatprep.subr.mxu0 %v2060_v3  ;;  %1722 = vmatprep.subr.mxu1 %v2060_v3  ;;  %v365_v8 = vld [vmem:[#allocation8 + $0x198] sm:$0xff]  ;;  %v364_v10 = vld [vmem:[#allocation8 + $0x190] sm:$0xff]  ;;  %v335_v11 = vld [vmem:[#allocation8 + $0xa8] sm:$0xff] }
  0x6e   : > { %434 = vmatpush1.msra.mxu0 %v383_v14  ;;  %1754 = vmatpush1.msra.mxu1 %v383_v14  ;;  %v367_v12 = vld [vmem:[#allocation8 + $0x1a8] sm:$0xff]  ;;  %v334_v13 = vld [vmem:[#allocation8 + $0xa0] sm:$0xff] }
  0x6f   : > { %435 = vmatprep.subr.mxu0 %v2060_v3  ;;  %1723 = vmatprep.subr.mxu1 %v2060_v3  ;;  %v366_v14 = vld [vmem:[#allocation8 + $0x1a0] sm:$0xff] }
  0x70   : > { %436 = vmatpush1.msra.mxu0 %v382_v15  ;;  %1755 = vmatpush1.msra.mxu1 %v382_v15  ;;  %v337_v15 = vld [vmem:[#allocation8 + $0xb8] sm:$0xff] }
  0x71   : > { %437 = vmatprep.subr.mxu0 %v2060_v3  ;;  %1724 = vmatprep.subr.mxu1 %v2060_v3 }
  0x72   : > { %438 = vmatpush1.msra.mxu0 %v381_v16  ;;  %1756 = vmatpush1.msra.mxu1 %v381_v16  ;;  %v369_v16 = vld [vmem:[#allocation8 + $0x1b8] sm:$0xff] }
  0x73   : > { %439 = vmatprep.subr.mxu0 %v2060_v3  ;;  %1725 = vmatprep.subr.mxu1 %v2060_v3 }
  0x74   : > { %440 = vmatpush1.msra.mxu0 %v380_v17  ;;  %1757 = vmatpush1.msra.mxu1 %v380_v17  ;;  %v336_v17 = vld [vmem:[#allocation8 + $0xb0] sm:$0xff] }
  0x75   : > { %441 = vmatprep.subr.mxu0 %v2060_v3  ;;  %1726 = vmatprep.subr.mxu1 %v2060_v3 }
  0x76   : > { %442 = vmatpush1.msra.mxu0 %v379_v18  ;;  %1758 = vmatpush1.msra.mxu1 %v379_v18  ;;  %v368_v18 = vld [vmem:[#allocation8 + $0x1b0] sm:$0xff] }
  0x77   : > { %443 = vmatprep.subr.mxu0 %v2060_v3  ;;  %1727 = vmatprep.subr.mxu1 %v2060_v3 }
  0x78   : > { %444 = vmatpush2.msra.mxu0 %v410_v19  ;;  %1759 = vmatpush2.msra.mxu1 %v410_v19  ;;  %v339_v19 = vld [vmem:[#allocation8 + $0xc8] sm:$0xff] }
  0x79   : > { %445 = vmatprep.subr.mxu0 %v2060_v3  ;;  %1728 = vmatprep.subr.mxu1 %v2060_v3 }
  0x7a   : > { %446 = vmatpush2.msra.mxu0 %v409_v20  ;;  %1760 = vmatpush2.msra.mxu1 %v409_v20  ;;  %v371_v20 = vld [vmem:[#allocation8 + $0x1c8] sm:$0xff] }
  0x7b   : > { %447 = vmatprep.subr.mxu0 %v2060_v3  ;;  %1729 = vmatprep.subr.mxu1 %v2060_v3 }
  0x7c   : > { %448 = vmatpush2.msra.mxu0 %v408_v21  ;;  %1761 = vmatpush2.msra.mxu1 %v408_v21  ;;  %v338_v21 = vld [vmem:[#allocation8 + $0xc0] sm:$0xff] }
  0x7d   : > { %449 = vmatprep.subr.mxu0 %v2060_v3  ;;  %1730 = vmatprep.subr.mxu1 %v2060_v3 }
  0x7e   : > { %450 = vmatpush2.msra.mxu0 %v407_v22  ;;  %1762 = vmatpush2.msra.mxu1 %v407_v22  ;;  %v370_v22 = vld [vmem:[#allocation8 + $0x1c0] sm:$0xff] }
  0x7f   : > { %451 = vmatprep.subr.mxu0 %v2060_v3  ;;  %1731 = vmatprep.subr.mxu1 %v2060_v3 }
  0x80   : > { %452 = vmatpush2.msra.mxu0 %v406_v23  ;;  %1763 = vmatpush2.msra.mxu1 %v406_v23  ;;  %v341_v23 = vld [vmem:[#allocation8 + $0xd8] sm:$0xff] }
  0x81   : > { %453 = vmatprep.subr.mxu0 %v2060_v3  ;;  %1732 = vmatprep.subr.mxu1 %v2060_v3 }
  0x82   : > { %454 = vmatpush2.msra.mxu0 %v405_v24  ;;  %1764 = vmatpush2.msra.mxu1 %v405_v24  ;;  %v373_v24 = vld [vmem:[#allocation8 + $0x1d8] sm:$0xff] }
  0x83   : > { %455 = vmatprep.subr.mxu0 %v2060_v3  ;;  %1733 = vmatprep.subr.mxu1 %v2060_v3 }
  0x84   : > { %456 = vmatpush2.msra.mxu0 %v404_v25  ;;  %1765 = vmatpush2.msra.mxu1 %v404_v25  ;;  %v340_v25 = vld [vmem:[#allocation8 + $0xd0] sm:$0xff] }
  0x85   : > { %457 = vmatprep.subr.mxu0 %v2060_v3  ;;  %1734 = vmatprep.subr.mxu1 %v2060_v3 }
  0x86   : > { %458 = vmatpush2.msra.mxu0 %v403_v26  ;;  %1766 = vmatpush2.msra.mxu1 %v403_v26  ;;  %v372_v26 = vld [vmem:[#allocation8 + $0x1d0] sm:$0xff] }
  0x87   : > { %459 = vmatprep.subr.mxu0 %v2060_v3  ;;  %1735 = vmatprep.subr.mxu1 %v2060_v3 }
  0x88   : > { %460 = vmatpush2.msra.mxu0 %v402_v27  ;;  %1767 = vmatpush2.msra.mxu1 %v402_v27  ;;  %v343_v27 = vld [vmem:[#allocation8 + $0xe8] sm:$0xff] }
  0x89   : > { %461 = vmatprep.subr.mxu0 %v2060_v3  ;;  %1736 = vmatprep.subr.mxu1 %v2060_v3 }
  0x8a   : > { %462 = vmatpush2.msra.mxu0 %v401_v28  ;;  %1768 = vmatpush2.msra.mxu1 %v401_v28  ;;  %v375_v28 = vld [vmem:[#allocation8 + $0x1e8] sm:$0xff] }
  0x8b   : > { %463 = vmatprep.subr.mxu0 %v2060_v3  ;;  %1737 = vmatprep.subr.mxu1 %v2060_v3 }
  0x8c   : > { %464 = vmatpush2.msra.mxu0 %v400_v29  ;;  %1769 = vmatpush2.msra.mxu1 %v400_v29  ;;  %v342_v29 = vld [vmem:[#allocation8 + $0xe0] sm:$0xff] }
  0x8d   : > { %465 = vmatprep.subr.mxu0 %v2060_v3  ;;  %1738 = vmatprep.subr.mxu1 %v2060_v3 }
  0x8e   : > { %466 = vmatpush2.msra.mxu0 %v399_v30  ;;  %1770 = vmatpush2.msra.mxu1 %v399_v30  ;;  %v374_v30 = vld [vmem:[#allocation8 + $0x1e0] sm:$0xff] }
  0x8f   : > { %467 = vmatprep.subr.mxu0 %v2060_v3  ;;  %1739 = vmatprep.subr.mxu1 %v2060_v3 }
  0x90   : > { %468 = vmatpush2.msra.mxu0 %v398_v31  ;;  %1771 = vmatpush2.msra.mxu1 %v398_v31  ;;  %v345_v31 = vld [vmem:[#allocation8 + $0xf8] sm:$0xff] }
  0x91   : > { %469 = vmatprep.subr.mxu0 %v2060_v3  ;;  %1740 = vmatprep.subr.mxu1 %v2060_v3 }
  0x92   : > { %470 = vmatpush2.msra.mxu0 %v397_v32  ;;  %1772 = vmatpush2.msra.mxu1 %v397_v32  ;;  %v377_v32 = vld [vmem:[#allocation8 + $0x1f8] sm:$0xff] }
  0x93   : > { %471 = vmatprep.subr.mxu0 %v2060_v3  ;;  %1741 = vmatprep.subr.mxu1 %v2060_v3 }
  0x94   : > { %472 = vmatpush2.msra.mxu0 %v396_v33  ;;  %1773 = vmatpush2.msra.mxu1 %v396_v33  ;;  %v344_v33 = vld [vmem:[#allocation8 + $0xf0] sm:$0xff] }
  0x95   : > { %473 = vmatprep.subr.mxu0 %v2060_v3  ;;  %1742 = vmatprep.subr.mxu1 %v2060_v3  ;;  %v331_v3 = vld [vmem:[#allocation8 + $0x88] sm:$0xff] }
  0x96   : > { %474 = vmatpush2.msra.mxu0 %v395_v34  ;;  %1774 = vmatpush2.msra.mxu1 %v395_v34  ;;  %v376_v34 = vld [vmem:[#allocation8 + $0x1f0] sm:$0xff] }
  0x97   : > { %475 = vmatprep.mubr.f32.mxu0 %v315_v35  ;;  %555 = vmatprep.mubr.f32.mxu1 %v347_v36  ;;  %v282_v35 = vld [vmem:[#allocation3 + $0x80] sm:$0xff]  ;;  %v298_v36 = vld [vmem:[#allocation3 + $0x10] sm:$0xff] }
  0x98   : > { %476 = vmatmul.mubr.f32.vlgmr.msra.gmra.mxu0 %v314_v37  ;;  %556 = vmatmul.mubr.f32.vlgmr.msra.gmra.mxu1 %v346_v38 }
  0x99   : > { %480 = vmatprep.mubr.f32.mxu0 %v317_v39  ;;  %560 = vmatprep.mubr.f32.mxu1 %v349_v40 }
  0x9c   : > { %481 = vmatmul.mubr.f32.gmra.mxu0 %v316_v41  ;;  %561 = vmatmul.mubr.f32.gmra.mxu1 %v348_v42 }
  0x9d   : > { %485 = vmatprep.mubr.f32.mxu0 %v319_v43  ;;  %565 = vmatprep.mubr.f32.mxu1 %v351_v44  ;;  %v283_v43 = vld [vmem:[#allocation3 + $0xc8] sm:$0xff]  ;;  %v299_v44 = vld [vmem:[#allocation3 + $0x70] sm:$0xff] }
  0xa0   : > { %486 = vmatmul.mubr.f32.gmra.mxu0 %v318_v45  ;;  %566 = vmatmul.mubr.f32.gmra.mxu1 %v350_v46  ;;  %v2061_v45 = vmov -1.0  }
  0xa1   : > { %490 = vmatprep.mubr.f32.mxu0 %v321_v47  ;;  %570 = vmatprep.mubr.f32.mxu1 %v353_v48 }
  0xa4   : > { %491 = vmatmul.mubr.f32.gmra.mxu0 %v320_v49  ;;  %571 = vmatmul.mubr.f32.gmra.mxu1 %v352_v50 }
  0xa5   : > { %495 = vmatprep.mubr.f32.mxu0 %v323_v51  ;;  %575 = vmatprep.mubr.f32.mxu1 %v355_v52 }
  0xa8   : > { %496 = vmatmul.mubr.f32.gmra.mxu0 %v322_v53  ;;  %576 = vmatmul.mubr.f32.gmra.mxu1 %v354_v54  ;;  %v284_v54 = vld [vmem:[#allocation3 + $0xe8] sm:$0xff] }
  0xa9   : > { %500 = vmatprep.mubr.f32.mxu0 %v325_v55  ;;  %580 = vmatprep.mubr.f32.mxu1 %v357_v56  ;;  %v300_v55 = vld [vmem:[#allocation3 + $0x50] sm:$0xff] }
  0xac   : > { %501 = vmatmul.mubr.f32.gmra.mxu0 %v324_v57  ;;  %581 = vmatmul.mubr.f32.gmra.mxu1 %v356_v58 }
  0xad   : > { %505 = vmatprep.mubr.f32.mxu0 %v327_v59  ;;  %585 = vmatprep.mubr.f32.mxu1 %v359_v60 }
  0xb0   : > { %506 = vmatmul.mubr.f32.gmra.mxu0 %v326_v61  ;;  %586 = vmatmul.mubr.f32.gmra.mxu1 %v358_v62 }
  0xb1   : > { %510 = vmatprep.mubr.f32.mxu0 %v329_v63  ;;  %590 = vmatprep.mubr.f32.mxu1 %v361_v0  ;;  %v285_v0 = vld [vmem:[#allocation3 + $0x78] sm:$0xff] }
  0xb4   : > { %511 = vmatmul.mubr.f32.gmra.mxu0 %v328_v1  ;;  %591 = vmatmul.mubr.f32.gmra.mxu1 %v360_v2  ;;  %v301_v1 = vld [vmem:[#allocation3 + $0xa0] sm:$0xff] }
  0xb5   : > { %515 = vmatprep.mubr.f32.mxu0 %v331_v3  ;;  %595 = vmatprep.mubr.f32.mxu1 %v363_v4 }
  0xb8   : > { %516 = vmatmul.mubr.f32.gmra.mxu0 %v330_v5  ;;  %596 = vmatmul.mubr.f32.gmra.mxu1 %v362_v6 }
  0xb9   : > { %520 = vmatprep.mubr.f32.mxu0 %v333_v7  ;;  %600 = vmatprep.mubr.f32.mxu1 %v365_v8 }
  0xbc   : > { %521 = vmatmul.mubr.f32.gmra.mxu0 %v332_v9  ;;  %601 = vmatmul.mubr.f32.gmra.mxu1 %v364_v10  ;;  %v286_v10 = vld [vmem:[#allocation3 + $0x8] sm:$0xff] }
  0xbd   : > { %525 = vmatprep.mubr.f32.mxu0 %v335_v11  ;;  %605 = vmatprep.mubr.f32.mxu1 %v367_v12  ;;  %v302_v11 = vld [vmem:[#allocation3 + $0xd8] sm:$0xff] }
  0xc0   : > { %526 = vmatmul.mubr.f32.gmra.mxu0 %v334_v13  ;;  %606 = vmatmul.mubr.f32.gmra.mxu1 %v366_v14 }
  0xc1   : > { %530 = vmatprep.mubr.f32.mxu0 %v337_v15  ;;  %610 = vmatprep.mubr.f32.mxu1 %v369_v16 }
  0xc4   : > { %531 = vmatmul.mubr.f32.gmra.mxu0 %v336_v17  ;;  %611 = vmatmul.mubr.f32.gmra.mxu1 %v368_v18 }
  0xc5   : > { %535 = vmatprep.mubr.f32.mxu0 %v339_v19  ;;  %615 = vmatprep.mubr.f32.mxu1 %v371_v20  ;;  %v287_v20 = vld [vmem:[#allocation3 + $0x90] sm:$0xff] }
  0xc8   : > { %536 = vmatmul.mubr.f32.gmra.mxu0 %v338_v21  ;;  %616 = vmatmul.mubr.f32.gmra.mxu1 %v370_v22  ;;  %v303_v21 = vld [vmem:[#allocation3 + $0x30] sm:$0xff] }
  0xc9   : > { %540 = vmatprep.mubr.f32.mxu0 %v341_v23  ;;  %620 = vmatprep.mubr.f32.mxu1 %v373_v24 }
  0xcc   : > { %541 = vmatmul.mubr.f32.gmra.mxu0 %v340_v25  ;;  %621 = vmatmul.mubr.f32.gmra.mxu1 %v372_v26 }
  0xcd   : > { %545 = vmatprep.mubr.f32.mxu0 %v343_v27  ;;  %625 = vmatprep.mubr.f32.mxu1 %v375_v28 }
  0xd0   : > { %546 = vmatmul.mubr.f32.gmra.mxu0 %v342_v29  ;;  %626 = vmatmul.mubr.f32.gmra.mxu1 %v374_v30  ;;  %v288_v30 = vld [vmem:[#allocation3 + $0x58] sm:$0xff] }
  0xd1   : > { %550 = vmatprep.mubr.f32.mxu0 %v345_v31  ;;  %630 = vmatprep.mubr.f32.mxu1 %v377_v32  ;;  %v304_v31 = vld [vmem:[#allocation3 + $0x20] sm:$0xff] }
  0xd4   : > { %551 = vmatmul.mubr.f32.gmra.mxu0 %v344_v33  ;;  %631 = vmatmul.mubr.f32.gmra.mxu1 %v376_v34 }
 0x158   : > { %v477_v37 = vpop.f32.mrf.mxu0  ;;  %v557_v38 = vpop.f32.mrf.mxu1 }
 0x159   : > { %v636_v39 = vadd.f32 %v477_v37, %v282_v35  ;;  %v652_v40 = vadd.f32 %v557_v38, %v298_v36 }
 0x15a   : > { %v479_v41 = vpop.f32.mrf.mxu0  ;;  %v559_v42 = vpop.f32.mrf.mxu1 }
 0x15b   : > { %668 = vst [vmem:[#allocation3 + $0x80] sm:$0xff] %v636_v39  ;;  %vm735_vm0 = vcmp.ge.f32.partialorder %v636_v39, 0.0  ;;  %684 = vst [vmem:[#allocation3 + $0x10] sm:$0xff] %v652_v40  ;;  %vm751_vm1 = vcmp.ge.f32.partialorder %v652_v40, 0.0  ;;  %v289_v40 = vld [vmem:[#allocation3 + $0xa8] sm:$0xff]  ;;  %v305_v41 = vld [vmem:[#allocation3 + $0xf0] sm:$0xff] }
 0x15c   : > { %v767_v46 = vsel %vm735_vm0, 1.0, %v2061_v45  ;;  %v783_v47 = vsel %vm751_vm1, 1.0, %v2061_v45  ;;  %v482_v48 = vpop.f32.mrf.mxu0  ;;  %v562_v49 = vpop.f32.mrf.mxu1 }
 0x15d   : > { %800 = vst [vmem:[#allocation2 + $0xb0] sm:$0xff] %v767_v46  ;;  %816 = vst [vmem:[#allocation2 + $0x38] sm:$0xff] %v783_v47  ;;  %v637_v50 = vadd.f32 %v482_v48, %v283_v43  ;;  %v653_v51 = vadd.f32 %v562_v49, %v299_v44 }
 0x15e   : > { %v484_v52 = vpop.f32.mrf.mxu0  ;;  %v564_v53 = vpop.f32.mrf.mxu1 }
 0x15f   : > { %669 = vst [vmem:[#allocation3 + $0xc8] sm:$0xff] %v637_v50  ;;  %vm736_vm2 = vcmp.ge.f32.partialorder %v637_v50, 0.0  ;;  %685 = vst [vmem:[#allocation3 + $0x70] sm:$0xff] %v653_v51  ;;  %vm752_vm3 = vcmp.ge.f32.partialorder %v653_v51, 0.0  ;;  %v290_v51 = vld [vmem:[#allocation3 + $0xd0] sm:$0xff]  ;;  %v306_v52 = vld [vmem:[#allocation3 + $0x88] sm:$0xff] }
 0x160   : > { %v768_v56 = vsel %vm736_vm2, 1.0, %v2061_v45  ;;  %v784_v57 = vsel %vm752_vm3, 1.0, %v2061_v45  ;;  %v487_v58 = vpop.f32.mrf.mxu0  ;;  %v567_v59 = vpop.f32.mrf.mxu1 }
 0x161   : > { %801 = vst [vmem:[#allocation2] sm:$0xff] %v768_v56  ;;  %817 = vst [vmem:[#allocation2 + $0x58] sm:$0xff] %v784_v57  ;;  %v638_v60 = vadd.f32 %v487_v58, %v284_v54  ;;  %v654_v61 = vadd.f32 %v567_v59, %v300_v55 }
 0x162   : > { %v489_v62 = vpop.f32.mrf.mxu0  ;;  %v569_v63 = vpop.f32.mrf.mxu1 }
 0x163   : > { %670 = vst [vmem:[#allocation3 + $0xe8] sm:$0xff] %v638_v60  ;;  %vm737_vm4 = vcmp.ge.f32.partialorder %v638_v60, 0.0  ;;  %686 = vst [vmem:[#allocation3 + $0x50] sm:$0xff] %v654_v61  ;;  %vm753_vm5 = vcmp.ge.f32.partialorder %v654_v61, 0.0  ;;  %v291_v61 = vld [vmem:[#allocation3 + $0xb0] sm:$0xff]  ;;  %v307_v62 = vld [vmem:[#allocation3 + $0x48] sm:$0xff] }
 0x164   : > { %v769_v2 = vsel %vm737_vm4, 1.0, %v2061_v45  ;;  %v785_v3 = vsel %vm753_vm5, 1.0, %v2061_v45  ;;  %v492_v4 = vpop.f32.mrf.mxu0  ;;  %v572_v5 = vpop.f32.mrf.mxu1 }
 0x165   : > { %802 = vst [vmem:[#allocation2 + $0xd8] sm:$0xff] %v769_v2  ;;  %818 = vst [vmem:[#allocation2 + $0x40] sm:$0xff] %v785_v3  ;;  %v639_v6 = vadd.f32 %v492_v4, %v285_v0  ;;  %v655_v7 = vadd.f32 %v572_v5, %v301_v1 }
 0x166   : > { %v494_v8 = vpop.f32.mrf.mxu0  ;;  %v574_v9 = vpop.f32.mrf.mxu1 }
 0x167   : > { %671 = vst [vmem:[#allocation3 + $0x78] sm:$0xff] %v639_v6  ;;  %vm738_vm6 = vcmp.ge.f32.partialorder %v639_v6, 0.0  ;;  %687 = vst [vmem:[#allocation3 + $0xa0] sm:$0xff] %v655_v7  ;;  %vm754_vm7 = vcmp.ge.f32.partialorder %v655_v7, 0.0  ;;  %v292_v7 = vld [vmem:[#allocation3 + $0x38] sm:$0xff] }
 0x168   : > { %v770_v12 = vsel %vm738_vm6, 1.0, %v2061_v45  ;;  %v786_v13 = vsel %vm754_vm7, 1.0, %v2061_v45  ;;  %v497_v14 = vpop.f32.mrf.mxu0  ;;  %v577_v15 = vpop.f32.mrf.mxu1  ;;  %v308_v8 = vld [vmem:[#allocation3 + $0xf8] sm:$0xff] }
 0x169   : > { %803 = vst [vmem:[#allocation2 + $0x18] sm:$0xff] %v770_v12  ;;  %819 = vst [vmem:[#allocation2 + $0xc8] sm:$0xff] %v786_v13  ;;  %v640_v16 = vadd.f32 %v497_v14, %v286_v10  ;;  %v656_v17 = vadd.f32 %v577_v15, %v302_v11 }
 0x16a   : > { %v499_v18 = vpop.f32.mrf.mxu0  ;;  %v579_v19 = vpop.f32.mrf.mxu1 }
 0x16b   : > { %672 = vst [vmem:[#allocation3 + $0x8] sm:$0xff] %v640_v16  ;;  %vm739_vm8 = vcmp.ge.f32.partialorder %v640_v16, 0.0  ;;  %688 = vst [vmem:[#allocation3 + $0xd8] sm:$0xff] %v656_v17  ;;  %vm755_vm9 = vcmp.ge.f32.partialorder %v656_v17, 0.0  ;;  %v293_v17 = vld [vmem:[#allocation3 + $0x40] sm:$0xff] }
 0x16c   : > { %v771_v22 = vsel %vm739_vm8, 1.0, %v2061_v45  ;;  %v787_v23 = vsel %vm755_vm9, 1.0, %v2061_v45  ;;  %v502_v24 = vpop.f32.mrf.mxu0  ;;  %v582_v25 = vpop.f32.mrf.mxu1  ;;  %v309_v18 = vld [vmem:[#allocation3 + $0xc0] sm:$0xff] }
 0x16d   : > { %804 = vst [vmem:[#allocation2 + $0x50] sm:$0xff] %v771_v22  ;;  %820 = vst [vmem:[#allocation2 + $0xe0] sm:$0xff] %v787_v23  ;;  %v641_v26 = vadd.f32 %v502_v24, %v287_v20  ;;  %v657_v27 = vadd.f32 %v582_v25, %v303_v21 }
 0x16e   : > { %v504_v28 = vpop.f32.mrf.mxu0  ;;  %v584_v29 = vpop.f32.mrf.mxu1 }
 0x16f   : > { %673 = vst [vmem:[#allocation3 + $0x90] sm:$0xff] %v641_v26  ;;  %vm740_vm10 = vcmp.ge.f32.partialorder %v641_v26, 0.0  ;;  %689 = vst [vmem:[#allocation3 + $0x30] sm:$0xff] %v657_v27  ;;  %vm756_vm11 = vcmp.ge.f32.partialorder %v657_v27, 0.0  ;;  %v294_v27 = vld [vmem:[#allocation3 + $0xe0] sm:$0xff]  ;;  %v310_v28 = vld [vmem:[#allocation3 + $0xb8] sm:$0xff] }
 0x170   : > { %v772_v32 = vsel %vm740_vm10, 1.0, %v2061_v45  ;;  %v788_v33 = vsel %vm756_vm11, 1.0, %v2061_v45  ;;  %v507_v34 = vpop.f32.mrf.mxu0  ;;  %v587_v35 = vpop.f32.mrf.mxu1 }
 0x171   : > { %805 = vst [vmem:[#allocation2 + $0x68] sm:$0xff] %v772_v32  ;;  %821 = vst [vmem:[#allocation2 + $0x90] sm:$0xff] %v788_v33  ;;  %v642_v36 = vadd.f32 %v507_v34, %v288_v30  ;;  %v658_v37 = vadd.f32 %v587_v35, %v304_v31 }
 0x172   : > { %v509_v38 = vpop.f32.mrf.mxu0  ;;  %v589_v39 = vpop.f32.mrf.mxu1 }
 0x173   : > { %674 = vst [vmem:[#allocation3 + $0x58] sm:$0xff] %v642_v36  ;;  %vm741_vm12 = vcmp.ge.f32.partialorder %v642_v36, 0.0  ;;  %690 = vst [vmem:[#allocation3 + $0x20] sm:$0xff] %v658_v37  ;;  %vm757_vm13 = vcmp.ge.f32.partialorder %v658_v37, 0.0  ;;  %v295_v37 = vld [vmem:[#allocation3 + $0x60] sm:$0xff] }
 0x174   : > { %v773_v42 = vsel %vm741_vm12, 1.0, %v2061_v45  ;;  %v789_v43 = vsel %vm757_vm13, 1.0, %v2061_v45  ;;  %v512_v44 = vpop.f32.mrf.mxu0  ;;  %v592_v46 = vpop.f32.mrf.mxu1  ;;  %v311_v38 = vld [vmem:[#allocation3] sm:$0xff] }
 0x175   : > { %806 = vst [vmem:[#allocation2 + $0x30] sm:$0xff] %v773_v42  ;;  %822 = vst [vmem:[#allocation2 + $0x70] sm:$0xff] %v789_v43  ;;  %v643_v47 = vadd.f32 %v512_v44, %v289_v40  ;;  %v659_v48 = vadd.f32 %v592_v46, %v305_v41 }
 0x176   : > { %v514_v49 = vpop.f32.mrf.mxu0  ;;  %v594_v50 = vpop.f32.mrf.mxu1 }
 0x177   : > { %675 = vst [vmem:[#allocation3 + $0xa8] sm:$0xff] %v643_v47  ;;  %vm742_vm14 = vcmp.ge.f32.partialorder %v643_v47, 0.0  ;;  %691 = vst [vmem:[#allocation3 + $0xf0] sm:$0xff] %v659_v48  ;;  %vm758_vm15 = vcmp.ge.f32.partialorder %v659_v48, 0.0  ;;  %v296_v48 = vld [vmem:[#allocation3 + $0x18] sm:$0xff]  ;;  %v312_v49 = vld [vmem:[#allocation3 + $0x28] sm:$0xff] }
 0x178   : > { %v774_v53 = vsel %vm742_vm14, 1.0, %v2061_v45  ;;  %v790_v54 = vsel %vm758_vm15, 1.0, %v2061_v45  ;;  %v517_v55 = vpop.f32.mrf.mxu0  ;;  %v597_v56 = vpop.f32.mrf.mxu1 }
 0x179   : > { %807 = vst [vmem:[#allocation2 + $0x48] sm:$0xff] %v774_v53  ;;  %823 = vst [vmem:[#allocation2 + $0xc0] sm:$0xff] %v790_v54  ;;  %v644_v57 = vadd.f32 %v517_v55, %v290_v51  ;;  %v660_v58 = vadd.f32 %v597_v56, %v306_v52 }
 0x17a   : > { %v519_v59 = vpop.f32.mrf.mxu0  ;;  %v599_v60 = vpop.f32.mrf.mxu1 }
 0x17b   : > { %676 = vst [vmem:[#allocation3 + $0xd0] sm:$0xff] %v644_v57  ;;  %vm743_vm0 = vcmp.ge.f32.partialorder %v644_v57, 0.0  ;;  %692 = vst [vmem:[#allocation3 + $0x88] sm:$0xff] %v660_v58  ;;  %vm759_vm1 = vcmp.ge.f32.partialorder %v660_v58, 0.0  ;;  %v297_v58 = vld [vmem:[#allocation3 + $0x68] sm:$0xff]  ;;  %v313_v59 = vld [vmem:[#allocation3 + $0x98] sm:$0xff] }
 0x17c   : > { %v775_v63 = vsel %vm743_vm0, 1.0, %v2061_v45  ;;  %v791_v0 = vsel %vm759_vm1, 1.0, %v2061_v45  ;;  %v522_v1 = vpop.f32.mrf.mxu0  ;;  %v602_v2 = vpop.f32.mrf.mxu1 }
 0x17d   : > { %808 = vst [vmem:[#allocation2 + $0x80] sm:$0xff] %v775_v63  ;;  %824 = vst [vmem:[#allocation2 + $0xa8] sm:$0xff] %v791_v0  ;;  %v645_v3 = vadd.f32 %v522_v1, %v291_v61  ;;  %v661_v4 = vadd.f32 %v602_v2, %v307_v62 }
 0x17e   : > { %v524_v5 = vpop.f32.mrf.mxu0  ;;  %v604_v6 = vpop.f32.mrf.mxu1 }
 0x17f   : > { %677 = vst [vmem:[#allocation3 + $0xb0] sm:$0xff] %v645_v3  ;;  %vm744_vm2 = vcmp.ge.f32.partialorder %v645_v3, 0.0  ;;  %693 = vst [vmem:[#allocation3 + $0x48] sm:$0xff] %v661_v4  ;;  %vm760_vm3 = vcmp.ge.f32.partialorder %v661_v4, 0.0 }
 0x180   : > { %v776_v9 = vsel %vm744_vm2, 1.0, %v2061_v45  ;;  %v792_v10 = vsel %vm760_vm3, 1.0, %v2061_v45  ;;  %v527_v11 = vpop.f32.mrf.mxu0  ;;  %v607_v12 = vpop.f32.mrf.mxu1 }
 0x181   : > { %809 = vst [vmem:[#allocation2 + $0x88] sm:$0xff] %v776_v9  ;;  %825 = vst [vmem:[#allocation2 + $0xd0] sm:$0xff] %v792_v10  ;;  %v646_v13 = vadd.f32 %v527_v11, %v292_v7  ;;  %v662_v14 = vadd.f32 %v607_v12, %v308_v8 }
 0x182   : > { %v529_v15 = vpop.f32.mrf.mxu0  ;;  %v609_v16 = vpop.f32.mrf.mxu1 }
 0x183   : > { %678 = vst [vmem:[#allocation3 + $0x38] sm:$0xff] %v646_v13  ;;  %vm745_vm4 = vcmp.ge.f32.partialorder %v646_v13, 0.0  ;;  %694 = vst [vmem:[#allocation3 + $0xf8] sm:$0xff] %v662_v14  ;;  %vm761_vm5 = vcmp.ge.f32.partialorder %v662_v14, 0.0 }
 0x184   : > { %v777_v19 = vsel %vm745_vm4, 1.0, %v2061_v45  ;;  %v793_v20 = vsel %vm761_vm5, 1.0, %v2061_v45  ;;  %v532_v21 = vpop.f32.mrf.mxu0  ;;  %v612_v22 = vpop.f32.mrf.mxu1 }
 0x185   : > { %810 = vst [vmem:[#allocation2 + $0xe8] sm:$0xff] %v777_v19  ;;  %826 = vst [vmem:[#allocation2 + $0x10] sm:$0xff] %v793_v20  ;;  %v647_v23 = vadd.f32 %v532_v21, %v293_v17  ;;  %v663_v24 = vadd.f32 %v612_v22, %v309_v18 }
 0x186   : > { %v534_v25 = vpop.f32.mrf.mxu0  ;;  %v614_v26 = vpop.f32.mrf.mxu1 }
 0x187   : > { %679 = vst [vmem:[#allocation3 + $0x40] sm:$0xff] %v647_v23  ;;  %vm746_vm6 = vcmp.ge.f32.partialorder %v647_v23, 0.0  ;;  %695 = vst [vmem:[#allocation3 + $0xc0] sm:$0xff] %v663_v24  ;;  %vm762_vm7 = vcmp.ge.f32.partialorder %v663_v24, 0.0 }
 0x188   : > { %v778_v29 = vsel %vm746_vm6, 1.0, %v2061_v45  ;;  %v794_v30 = vsel %vm762_vm7, 1.0, %v2061_v45  ;;  %v537_v31 = vpop.f32.mrf.mxu0  ;;  %v617_v32 = vpop.f32.mrf.mxu1 }
 0x189   : > { %811 = vst [vmem:[#allocation2 + $0xb8] sm:$0xff] %v778_v29  ;;  %827 = vst [vmem:[#allocation2 + $0x28] sm:$0xff] %v794_v30  ;;  %v648_v33 = vadd.f32 %v537_v31, %v294_v27  ;;  %v664_v34 = vadd.f32 %v617_v32, %v310_v28 }
 0x18a   : > { %v539_v35 = vpop.f32.mrf.mxu0  ;;  %v619_v36 = vpop.f32.mrf.mxu1 }
 0x18b   : > { %680 = vst [vmem:[#allocation3 + $0xe0] sm:$0xff] %v648_v33  ;;  %vm747_vm8 = vcmp.ge.f32.partialorder %v648_v33, 0.0  ;;  %696 = vst [vmem:[#allocation3 + $0xb8] sm:$0xff] %v664_v34  ;;  %vm763_vm9 = vcmp.ge.f32.partialorder %v664_v34, 0.0 }
 0x18c   : > { %v779_v39 = vsel %vm747_vm8, 1.0, %v2061_v45  ;;  %v795_v40 = vsel %vm763_vm9, 1.0, %v2061_v45  ;;  %v542_v41 = vpop.f32.mrf.mxu0  ;;  %v622_v42 = vpop.f32.mrf.mxu1 }
 0x18d   : > { %812 = vst [vmem:[#allocation2 + $0x60] sm:$0xff] %v779_v39  ;;  %828 = vst [vmem:[#allocation2 + $0xa0] sm:$0xff] %v795_v40  ;;  %v649_v43 = vadd.f32 %v542_v41, %v295_v37  ;;  %v665_v44 = vadd.f32 %v622_v42, %v311_v38 }
 0x18e   : > { %v544_v46 = vpop.f32.mrf.mxu0  ;;  %v624_v47 = vpop.f32.mrf.mxu1 }
 0x18f   : > { %681 = vst [vmem:[#allocation3 + $0x60] sm:$0xff] %v649_v43  ;;  %vm748_vm10 = vcmp.ge.f32.partialorder %v649_v43, 0.0  ;;  %697 = vst [vmem:[#allocation3] sm:$0xff] %v665_v44  ;;  %vm764_vm11 = vcmp.ge.f32.partialorder %v665_v44, 0.0 }
 0x190   : > { %v780_v50 = vsel %vm748_vm10, 1.0, %v2061_v45  ;;  %v796_v51 = vsel %vm764_vm11, 1.0, %v2061_v45  ;;  %v547_v52 = vpop.f32.mrf.mxu0  ;;  %v627_v53 = vpop.f32.mrf.mxu1 }
 0x191   : > { %813 = vst [vmem:[#allocation2 + $0xf0] sm:$0xff] %v780_v50  ;;  %829 = vst [vmem:[#allocation2 + $0xf8] sm:$0xff] %v796_v51  ;;  %v650_v54 = vadd.f32 %v547_v52, %v296_v48  ;;  %v666_v55 = vadd.f32 %v627_v53, %v312_v49 }
 0x192   : > { %v549_v56 = vpop.f32.mrf.mxu0  ;;  %v629_v57 = vpop.f32.mrf.mxu1 }
 0x193   : > { %682 = vst [vmem:[#allocation3 + $0x18] sm:$0xff] %v650_v54  ;;  %vm749_vm12 = vcmp.ge.f32.partialorder %v650_v54, 0.0  ;;  %698 = vst [vmem:[#allocation3 + $0x28] sm:$0xff] %v666_v55  ;;  %vm765_vm13 = vcmp.ge.f32.partialorder %v666_v55, 0.0 }
 0x194   : > { %v781_v60 = vsel %vm749_vm12, 1.0, %v2061_v45  ;;  %v797_v61 = vsel %vm765_vm13, 1.0, %v2061_v45  ;;  %v552_v62 = vpop.f32.mrf.mxu0  ;;  %v632_v63 = vpop.f32.mrf.mxu1 }
 0x195   : > { %814 = vst [vmem:[#allocation2 + $0x8] sm:$0xff] %v781_v60  ;;  %830 = vst [vmem:[#allocation2 + $0x20] sm:$0xff] %v797_v61  ;;  %v651_v0 = vadd.f32 %v552_v62, %v297_v58  ;;  %v667_v1 = vadd.f32 %v632_v63, %v313_v59 }
 0x196   : > { %v554_v2 = vpop.f32.mrf.mxu0  ;;  %v634_v3 = vpop.f32.mrf.mxu1 }
 0x197   : > { %683 = vst [vmem:[#allocation3 + $0x68] sm:$0xff] %v651_v0  ;;  %vm750_vm14 = vcmp.ge.f32.partialorder %v651_v0, 0.0  ;;  %699 = vst [vmem:[#allocation3 + $0x98] sm:$0xff] %v667_v1  ;;  %vm766_vm15 = vcmp.ge.f32.partialorder %v667_v1, 0.0 }
 0x198   : > { %v782_v4 = vsel %vm750_vm14, 1.0, %v2061_v45  ;;  %v798_v5 = vsel %vm766_vm15, 1.0, %v2061_v45 }
 0x199   : > { %815 = vst [vmem:[#allocation2 + $0x78] sm:$0xff] %v782_v4  ;;  %831 = vst [vmem:[#allocation2 + $0x98] sm:$0xff] %v798_v5 }
 0x19a PF: > { %p1702_p4 = scmp.ne.s32.totalorder %s2042_s12, 1 }
 0x19c   : > { %834 = sbr.rel (%p1702_p4) target bundleno = 790 (0x316), region = 56 }
 0x1a1   : > { %v947_v6 = vld [vmem:[#allocation2 + $0x78] sm:$0xff]  ;;  %v2062_v7 = vmov 0.0   ;;  %v946_v8 = vld [vmem:[#allocation2 + $0x8] sm:$0xff]  ;;  %v945_v9 = vld [vmem:[#allocation2 + $0xf0] sm:$0xff] }
 0x1a2   : > { %964 = vmatprep.subr.mxu0 %v2062_v7  ;;  %1775 = vmatprep.subr.mxu1 %v2062_v7  ;;  %v944_v45 = vld [vmem:[#allocation2 + $0x60] sm:$0xff]  ;;  %v943_v10 = vld [vmem:[#allocation2 + $0xb8] sm:$0xff]  ;;  %v942_v11 = vld [vmem:[#allocation2 + $0xe8] sm:$0xff] }
 0x1a3   : > { %965 = vmatpush1.msra.mxu0 %v947_v6  ;;  %1807 = vmatpush1.msra.mxu1 %v947_v6  ;;  %v2266_v12 = vld [vmem:[#allocation2 + $0x88] sm:$0xff]  ;;  %v2270_v13 = vld [vmem:[#allocation2 + $0x80] sm:$0xff]  ;;  %v2282_v15 = vld [vmem:[#allocation2 + $0x30] sm:$0xff] }
 0x1a4   : > { %966 = vmatprep.subr.mxu0 %v2062_v7  ;;  %1776 = vmatprep.subr.mxu1 %v2062_v7  ;;  %v2276_v14 = vld [vmem:[#allocation2 + $0x48] sm:$0xff]  ;;  %v2294_v17 = vld [vmem:[#allocation2 + $0x50] sm:$0xff]  ;;  %v2300_v18 = vld [vmem:[#allocation2 + $0x18] sm:$0xff] }
 0x1a5   : > { %967 = vmatpush1.msra.mxu0 %v946_v8  ;;  %1808 = vmatpush1.msra.mxu1 %v946_v8  ;;  %v2288_v16 = vld [vmem:[#allocation2 + $0x68] sm:$0xff]  ;;  %v2306_v19 = vld [vmem:[#allocation2 + $0xd8] sm:$0xff]  ;;  %v2312_v20 = vld [vmem:[#allocation2] sm:$0xff] }
 0x1a6   : > { %968 = vmatprep.subr.mxu0 %v2062_v7  ;;  %1777 = vmatprep.subr.mxu1 %v2062_v7  ;;  %v2318_v21 = vld [vmem:[#allocation2 + $0xb0] sm:$0xff]  ;;  %v963_v22 = vld [vmem:[#allocation2 + $0x98] sm:$0xff]  ;;  %v868_v23 = vld [vmem:[#allocation8 + $0x8] sm:$0xff] }
 0x1a7   : > { %969 = vmatpush1.msra.mxu0 %v945_v9  ;;  %1809 = vmatpush1.msra.mxu1 %v945_v9  ;;  %v962_v24 = vld [vmem:[#allocation2 + $0x20] sm:$0xff]  ;;  %v961_v25 = vld [vmem:[#allocation2 + $0xf8] sm:$0xff]  ;;  %v959_v27 = vld [vmem:[#allocation2 + $0x28] sm:$0xff] }
 0x1a8   : > { %970 = vmatprep.subr.mxu0 %v2062_v7  ;;  %1778 = vmatprep.subr.mxu1 %v2062_v7  ;;  %v960_v26 = vld [vmem:[#allocation2 + $0xa0] sm:$0xff]  ;;  %v958_v28 = vld [vmem:[#allocation2 + $0x10] sm:$0xff]  ;;  %v2340_v30 = vld [vmem:[#allocation2 + $0xa8] sm:$0xff] }
 0x1a9   : > { %971 = vmatpush1.msra.mxu0 %v944_v45  ;;  %1810 = vmatpush1.msra.mxu1 %v944_v45  ;;  %v957_v29 = vld [vmem:[#allocation2 + $0xd0] sm:$0xff]  ;;  %v2344_v31 = vld [vmem:[#allocation2 + $0xc0] sm:$0xff]  ;;  %v2367_v35 = vld [vmem:[#allocation2 + $0xc8] sm:$0xff] }
 0x1aa   : > { %972 = vmatprep.subr.mxu0 %v2062_v7  ;;  %1779 = vmatprep.subr.mxu1 %v2062_v7  ;;  %v2349_v32 = vld [vmem:[#allocation2 + $0x70] sm:$0xff]  ;;  %v2361_v34 = vld [vmem:[#allocation2 + $0xe0] sm:$0xff]  ;;  %v2379_v37 = vld [vmem:[#allocation2 + $0x58] sm:$0xff] }
 0x1ab   : > { %973 = vmatpush1.msra.mxu0 %v943_v10  ;;  %1811 = vmatpush1.msra.mxu1 %v943_v10  ;;  %v2355_v33 = vld [vmem:[#allocation2 + $0x90] sm:$0xff]  ;;  %v2373_v36 = vld [vmem:[#allocation2 + $0x40] sm:$0xff]  ;;  %v2385_v38 = vld [vmem:[#allocation2 + $0x38] sm:$0xff] }
 0x1ac   : > { %974 = vmatprep.subr.mxu0 %v2062_v7  ;;  %1780 = vmatprep.subr.mxu1 %v2062_v7  ;;  %v867_v39 = vld [vmem:[#allocation8] sm:$0xff]  ;;  %v870_v40 = vld [vmem:[#allocation8 + $0x18] sm:$0xff]  ;;  %v900_v41 = vld [vmem:[#allocation8 + $0x108] sm:$0xff] }
 0x1ad   : > { %975 = vmatpush1.msra.mxu0 %v942_v11  ;;  %1812 = vmatpush1.msra.mxu1 %v942_v11  ;;  %v899_v42 = vld [vmem:[#allocation8 + $0x100] sm:$0xff]  ;;  %v902_v43 = vld [vmem:[#allocation8 + $0x118] sm:$0xff]  ;;  %v869_v44 = vld [vmem:[#allocation8 + $0x10] sm:$0xff] }
 0x1ae   : > { %976 = vmatprep.subr.mxu0 %v2062_v7  ;;  %1781 = vmatprep.subr.mxu1 %v2062_v7  ;;  %v872_v46 = vld [vmem:[#allocation8 + $0x28] sm:$0xff]  ;;  %v901_v47 = vld [vmem:[#allocation8 + $0x110] sm:$0xff]  ;;  %v871_v49 = vld [vmem:[#allocation8 + $0x20] sm:$0xff] }
 0x1af   : > { %977 = vmatpush1.msra.mxu0 %v2266_v12  ;;  %1813 = vmatpush1.msra.mxu1 %v2266_v12  ;;  %v904_v48 = vld [vmem:[#allocation8 + $0x128] sm:$0xff]  ;;  %v874_v50 = vld [vmem:[#allocation8 + $0x38] sm:$0xff]  ;;  %v903_v51 = vld [vmem:[#allocation8 + $0x120] sm:$0xff] }
 0x1b0   : > { %978 = vmatprep.subr.mxu0 %v2062_v7  ;;  %1782 = vmatprep.subr.mxu1 %v2062_v7  ;;  %v906_v52 = vld [vmem:[#allocation8 + $0x138] sm:$0xff]  ;;  %v873_v53 = vld [vmem:[#allocation8 + $0x30] sm:$0xff]  ;;  %v876_v54 = vld [vmem:[#allocation8 + $0x48] sm:$0xff] }
 0x1b1   : > { %979 = vmatpush1.msra.mxu0 %v2270_v13  ;;  %1814 = vmatpush1.msra.mxu1 %v2270_v13  ;;  %v905_v55 = vld [vmem:[#allocation8 + $0x130] sm:$0xff]  ;;  %v908_v56 = vld [vmem:[#allocation8 + $0x148] sm:$0xff]  ;;  %v875_v57 = vld [vmem:[#allocation8 + $0x40] sm:$0xff] }
 0x1b2   : > { %980 = vmatprep.subr.mxu0 %v2062_v7  ;;  %1783 = vmatprep.subr.mxu1 %v2062_v7  ;;  %v878_v58 = vld [vmem:[#allocation8 + $0x58] sm:$0xff]  ;;  %v907_v59 = vld [vmem:[#allocation8 + $0x140] sm:$0xff]  ;;  %v877_v61 = vld [vmem:[#allocation8 + $0x50] sm:$0xff] }
 0x1b3   : > { %981 = vmatpush1.msra.mxu0 %v2276_v14  ;;  %1815 = vmatpush1.msra.mxu1 %v2276_v14  ;;  %v910_v60 = vld [vmem:[#allocation8 + $0x158] sm:$0xff]  ;;  %v880_v62 = vld [vmem:[#allocation8 + $0x68] sm:$0xff]  ;;  %v909_v63 = vld [vmem:[#allocation8 + $0x150] sm:$0xff] }
 0x1b4   : > { %982 = vmatprep.subr.mxu0 %v2062_v7  ;;  %1784 = vmatprep.subr.mxu1 %v2062_v7  ;;  %v912_v0 = vld [vmem:[#allocation8 + $0x168] sm:$0xff]  ;;  %v879_v1 = vld [vmem:[#allocation8 + $0x60] sm:$0xff]  ;;  %v882_v2 = vld [vmem:[#allocation8 + $0x78] sm:$0xff] }
 0x1b5   : > { %983 = vmatpush1.msra.mxu0 %v2282_v15  ;;  %1816 = vmatpush1.msra.mxu1 %v2282_v15  ;;  %v911_v3 = vld [vmem:[#allocation8 + $0x160] sm:$0xff]  ;;  %v914_v4 = vld [vmem:[#allocation8 + $0x178] sm:$0xff]  ;;  %v881_v5 = vld [vmem:[#allocation8 + $0x70] sm:$0xff] }
 0x1b6   : > { %984 = vmatprep.subr.mxu0 %v2062_v7  ;;  %1785 = vmatprep.subr.mxu1 %v2062_v7  ;;  %v884_v6 = vld [vmem:[#allocation8 + $0x88] sm:$0xff]  ;;  %v883_v9 = vld [vmem:[#allocation8 + $0x80] sm:$0xff]  ;;  %v886_v45 = vld [vmem:[#allocation8 + $0x98] sm:$0xff] }
 0x1b7   : > { %985 = vmatpush1.msra.mxu0 %v2288_v16  ;;  %1817 = vmatpush1.msra.mxu1 %v2288_v16  ;;  %v916_v8 = vld [vmem:[#allocation8 + $0x188] sm:$0xff]  ;;  %v915_v10 = vld [vmem:[#allocation8 + $0x180] sm:$0xff]  ;;  %v918_v11 = vld [vmem:[#allocation8 + $0x198] sm:$0xff] }
 0x1b8   : > { %986 = vmatprep.subr.mxu0 %v2062_v7  ;;  %1786 = vmatprep.subr.mxu1 %v2062_v7 }
 0x1b9   : > { %987 = vmatpush1.msra.mxu0 %v2294_v17  ;;  %1818 = vmatpush1.msra.mxu1 %v2294_v17 }
 0x1ba   : > { %988 = vmatprep.subr.mxu0 %v2062_v7  ;;  %1787 = vmatprep.subr.mxu1 %v2062_v7 }
 0x1bb   : > { %989 = vmatpush1.msra.mxu0 %v2300_v18  ;;  %1819 = vmatpush1.msra.mxu1 %v2300_v18 }
 0x1bc   : > { %990 = vmatprep.subr.mxu0 %v2062_v7  ;;  %1788 = vmatprep.subr.mxu1 %v2062_v7 }
 0x1bd   : > { %991 = vmatpush1.msra.mxu0 %v2306_v19  ;;  %1820 = vmatpush1.msra.mxu1 %v2306_v19 }
 0x1be   : > { %992 = vmatprep.subr.mxu0 %v2062_v7  ;;  %1789 = vmatprep.subr.mxu1 %v2062_v7 }
 0x1bf   : > { %993 = vmatpush1.msra.mxu0 %v2312_v20  ;;  %1821 = vmatpush1.msra.mxu1 %v2312_v20 }
 0x1c0   : > { %994 = vmatprep.subr.mxu0 %v2062_v7  ;;  %1790 = vmatprep.subr.mxu1 %v2062_v7 }
 0x1c1   : > { %995 = vmatpush1.msra.mxu0 %v2318_v21  ;;  %1822 = vmatpush1.msra.mxu1 %v2318_v21 }
 0x1c2   : > { %996 = vmatprep.subr.mxu0 %v2062_v7  ;;  %1791 = vmatprep.subr.mxu1 %v2062_v7 }
 0x1c3   : > { %997 = vmatpush2.msra.mxu0 %v963_v22  ;;  %1823 = vmatpush2.msra.mxu1 %v963_v22  ;;  %v885_v22 = vld [vmem:[#allocation8 + $0x90] sm:$0xff] }
 0x1c4   : > { %998 = vmatprep.subr.mxu0 %v2062_v7  ;;  %1028 = vmatprep.mubr.f32.mxu0 %v868_v23  ;;  %v888_v23 = vld [vmem:[#allocation8 + $0xa8] sm:$0xff] }
 0x1c5   : > { %999 = vmatpush2.msra.mxu0 %v962_v24  ;;  %1792 = vmatprep.subr.mxu1 %v2062_v7 }
 0x1c6   : > { %1000 = vmatprep.subr.mxu0 %v2062_v7  ;;  %1824 = vmatpush2.msra.mxu1 %v962_v24  ;;  %v917_v24 = vld [vmem:[#allocation8 + $0x190] sm:$0xff] }
 0x1c7   : > { %1001 = vmatpush2.msra.mxu0 %v961_v25  ;;  %1793 = vmatprep.subr.mxu1 %v2062_v7 }
 0x1c8   : > { %1002 = vmatprep.subr.mxu0 %v2062_v7  ;;  %1825 = vmatpush2.msra.mxu1 %v961_v25  ;;  %v920_v25 = vld [vmem:[#allocation8 + $0x1a8] sm:$0xff] }
 0x1c9   : > { %1003 = vmatpush2.msra.mxu0 %v960_v26  ;;  %1794 = vmatprep.subr.mxu1 %v2062_v7 }
 0x1ca   : > { %1004 = vmatprep.subr.mxu0 %v2062_v7  ;;  %1826 = vmatpush2.msra.mxu1 %v960_v26  ;;  %v887_v26 = vld [vmem:[#allocation8 + $0xa0] sm:$0xff] }
 0x1cb   : > { %1005 = vmatpush2.msra.mxu0 %v959_v27  ;;  %1795 = vmatprep.subr.mxu1 %v2062_v7 }
 0x1cc   : > { %1006 = vmatprep.subr.mxu0 %v2062_v7  ;;  %1827 = vmatpush2.msra.mxu1 %v959_v27  ;;  %v890_v27 = vld [vmem:[#allocation8 + $0xb8] sm:$0xff] }
 0x1cd   : > { %1007 = vmatpush2.msra.mxu0 %v958_v28  ;;  %1796 = vmatprep.subr.mxu1 %v2062_v7 }
 0x1ce   : > { %1008 = vmatprep.subr.mxu0 %v2062_v7  ;;  %1828 = vmatpush2.msra.mxu1 %v958_v28  ;;  %v919_v28 = vld [vmem:[#allocation8 + $0x1a0] sm:$0xff] }
 0x1cf   : > { %1009 = vmatpush2.msra.mxu0 %v957_v29  ;;  %1797 = vmatprep.subr.mxu1 %v2062_v7 }
 0x1d0   : > { %1010 = vmatprep.subr.mxu0 %v2062_v7  ;;  %1829 = vmatpush2.msra.mxu1 %v957_v29  ;;  %v922_v29 = vld [vmem:[#allocation8 + $0x1b8] sm:$0xff] }
 0x1d1   : > { %1011 = vmatpush2.msra.mxu0 %v2340_v30  ;;  %1798 = vmatprep.subr.mxu1 %v2062_v7 }
 0x1d2   : > { %1012 = vmatprep.subr.mxu0 %v2062_v7  ;;  %1830 = vmatpush2.msra.mxu1 %v2340_v30 }
 0x1d3   : > { %1013 = vmatpush2.msra.mxu0 %v2344_v31  ;;  %1799 = vmatprep.subr.mxu1 %v2062_v7 }
 0x1d4   : > { %1014 = vmatprep.subr.mxu0 %v2062_v7  ;;  %1831 = vmatpush2.msra.mxu1 %v2344_v31 }
 0x1d5   : > { %1015 = vmatpush2.msra.mxu0 %v2349_v32  ;;  %1800 = vmatprep.subr.mxu1 %v2062_v7 }
 0x1d6   : > { %1016 = vmatprep.subr.mxu0 %v2062_v7  ;;  %1832 = vmatpush2.msra.mxu1 %v2349_v32 }
 0x1d7   : > { %1017 = vmatpush2.msra.mxu0 %v2355_v33  ;;  %1801 = vmatprep.subr.mxu1 %v2062_v7 }
 0x1d8   : > { %1018 = vmatprep.subr.mxu0 %v2062_v7  ;;  %1833 = vmatpush2.msra.mxu1 %v2355_v33 }
 0x1d9   : > { %1019 = vmatpush2.msra.mxu0 %v2361_v34  ;;  %1802 = vmatprep.subr.mxu1 %v2062_v7 }
 0x1da   : > { %1020 = vmatprep.subr.mxu0 %v2062_v7  ;;  %1834 = vmatpush2.msra.mxu1 %v2361_v34 }
 0x1db   : > { %1021 = vmatpush2.msra.mxu0 %v2367_v35  ;;  %1803 = vmatprep.subr.mxu1 %v2062_v7 }
 0x1dc   : > { %1022 = vmatprep.subr.mxu0 %v2062_v7  ;;  %1835 = vmatpush2.msra.mxu1 %v2367_v35 }
 0x1dd   : > { %1023 = vmatpush2.msra.mxu0 %v2373_v36  ;;  %1804 = vmatprep.subr.mxu1 %v2062_v7 }
 0x1de   : > { %1024 = vmatprep.subr.mxu0 %v2062_v7  ;;  %1836 = vmatpush2.msra.mxu1 %v2373_v36 }
 0x1df   : > { %1025 = vmatpush2.msra.mxu0 %v2379_v37  ;;  %1805 = vmatprep.subr.mxu1 %v2062_v7 }
 0x1e0   : > { %1026 = vmatprep.subr.mxu0 %v2062_v7  ;;  %1837 = vmatpush2.msra.mxu1 %v2379_v37 }
 0x1e1   : > { %1027 = vmatpush2.msra.mxu0 %v2385_v38  ;;  %1806 = vmatprep.subr.mxu1 %v2062_v7  ;;  %v913_v7 = vld [vmem:[#allocation8 + $0x170] sm:$0xff] }
 0x1e2   : > { %1029 = vmatmul.mubr.f32.vlgmr.msra.gmra.mxu0 %v867_v39  ;;  %1838 = vmatpush2.msra.mxu1 %v2385_v38  ;;  %v889_v39 = vld [vmem:[#allocation8 + $0xb0] sm:$0xff] }
 0x1e3   : > { %1033 = vmatprep.mubr.f32.mxu0 %v870_v40  ;;  %1108 = vmatprep.mubr.f32.mxu1 %v900_v41  ;;  %v892_v40 = vld [vmem:[#allocation8 + $0xc8] sm:$0xff]  ;;  %v921_v41 = vld [vmem:[#allocation8 + $0x1b0] sm:$0xff] }
 0x1e4   : > { %1109 = vmatmul.mubr.f32.vlgmr.msra.gmra.mxu1 %v899_v42  ;;  %v924_v42 = vld [vmem:[#allocation8 + $0x1c8] sm:$0xff] }
 0x1e5   : > { %1113 = vmatprep.mubr.f32.mxu1 %v902_v43  ;;  %v891_v43 = vld [vmem:[#allocation8 + $0xc0] sm:$0xff] }
 0x1e6   : > { %1034 = vmatmul.mubr.f32.gmra.mxu0 %v869_v44  ;;  %v894_v44 = vld [vmem:[#allocation8 + $0xd8] sm:$0xff] }
 0x1e7   : > { %1038 = vmatprep.mubr.f32.mxu0 %v872_v46  ;;  %v923_v46 = vld [vmem:[#allocation8 + $0x1c0] sm:$0xff] }
 0x1e8   : > { %1114 = vmatmul.mubr.f32.gmra.mxu1 %v901_v47  ;;  %v926_v47 = vld [vmem:[#allocation8 + $0x1d8] sm:$0xff] }
 0x1e9   : > { %1118 = vmatprep.mubr.f32.mxu1 %v904_v48  ;;  %v893_v48 = vld [vmem:[#allocation8 + $0xd0] sm:$0xff] }
 0x1ea   : > { %1039 = vmatmul.mubr.f32.gmra.mxu0 %v871_v49  ;;  %v896_v49 = vld [vmem:[#allocation8 + $0xe8] sm:$0xff] }
 0x1eb   : > { %1043 = vmatprep.mubr.f32.mxu0 %v874_v50  ;;  %v925_v50 = vld [vmem:[#allocation8 + $0x1d0] sm:$0xff] }
 0x1ec   : > { %1119 = vmatmul.mubr.f32.gmra.mxu1 %v903_v51  ;;  %v928_v51 = vld [vmem:[#allocation8 + $0x1e8] sm:$0xff] }
 0x1ed   : > { %1123 = vmatprep.mubr.f32.mxu1 %v906_v52  ;;  %v895_v52 = vld [vmem:[#allocation8 + $0xe0] sm:$0xff] }
 0x1ee   : > { %1044 = vmatmul.mubr.f32.gmra.mxu0 %v873_v53  ;;  %v898_v53 = vld [vmem:[#allocation8 + $0xf8] sm:$0xff] }
 0x1ef   : > { %1048 = vmatprep.mubr.f32.mxu0 %v876_v54  ;;  %v927_v54 = vld [vmem:[#allocation8 + $0x1e0] sm:$0xff] }
 0x1f0   : > { %1124 = vmatmul.mubr.f32.gmra.mxu1 %v905_v55  ;;  %v930_v55 = vld [vmem:[#allocation8 + $0x1f8] sm:$0xff] }
 0x1f1   : > { %1128 = vmatprep.mubr.f32.mxu1 %v908_v56  ;;  %v897_v56 = vld [vmem:[#allocation8 + $0xf0] sm:$0xff] }
 0x1f2   : > { %1049 = vmatmul.mubr.f32.gmra.mxu0 %v875_v57  ;;  %v929_v57 = vld [vmem:[#allocation8 + $0x1f0] sm:$0xff] }
 0x1f3   : > { %1053 = vmatprep.mubr.f32.mxu0 %v878_v58  ;;  %v2395_v58 = vld [vmem:[#allocation2 + $0xf0] sm:$0xff] }
 0x1f4   : > { %1129 = vmatmul.mubr.f32.gmra.mxu1 %v907_v59  ;;  %1568 = vst [vmem:[#allocation10 + $0x68] sm:$0xff] %v2395_v58  ;;  %v2398_v59 = vld [vmem:[#allocation2 + $0x8] sm:$0xff] }
 0x1f5   : > { %1133 = vmatprep.mubr.f32.mxu1 %v910_v60  ;;  %1569 = vst [vmem:[#allocation10 + $0x70] sm:$0xff] %v2398_v59  ;;  %v2401_v60 = vld [vmem:[#allocation2 + $0x78] sm:$0xff] }
 0x1f6   : > { %1054 = vmatmul.mubr.f32.gmra.mxu0 %v877_v61  ;;  %1570 = vst [vmem:[#allocation10 + $0x78] sm:$0xff] %v2401_v60  ;;  %v2404_v61 = vld [vmem:[#allocation2 + $0xd0] sm:$0xff] }
 0x1f7   : > { %1058 = vmatprep.mubr.f32.mxu0 %v880_v62  ;;  %1580 = vst [vmem:[#allocation10 + $0xc8] sm:$0xff] %v2404_v61  ;;  %v2407_v62 = vld [vmem:[#allocation2 + $0x10] sm:$0xff] }
 0x1f8   : > { %1134 = vmatmul.mubr.f32.gmra.mxu1 %v909_v63  ;;  %1581 = vst [vmem:[#allocation10 + $0xd0] sm:$0xff] %v2407_v62  ;;  %v2410_v63 = vld [vmem:[#allocation2 + $0x28] sm:$0xff] }
 0x1f9   : > { %1138 = vmatprep.mubr.f32.mxu1 %v912_v0  ;;  %1582 = vst [vmem:[#allocation10 + $0xd8] sm:$0xff] %v2410_v63  ;;  %v2413_v0 = vld [vmem:[#allocation2 + $0xa0] sm:$0xff] }
 0x1fa   : > { %1059 = vmatmul.mubr.f32.gmra.mxu0 %v879_v1  ;;  %1583 = vst [vmem:[#allocation10 + $0xe0] sm:$0xff] %v2413_v0  ;;  %v2416_v1 = vld [vmem:[#allocation2 + $0xf8] sm:$0xff] }
 0x1fb   : > { %1063 = vmatprep.mubr.f32.mxu0 %v882_v2  ;;  %1584 = vst [vmem:[#allocation10 + $0xe8] sm:$0xff] %v2416_v1  ;;  %v2419_v2 = vld [vmem:[#allocation2 + $0x20] sm:$0xff] }
 0x1fc   : > { %1139 = vmatmul.mubr.f32.gmra.mxu1 %v911_v3  ;;  %1585 = vst [vmem:[#allocation10 + $0xf0] sm:$0xff] %v2419_v2  ;;  %v2422_v3 = vld [vmem:[#allocation2 + $0x98] sm:$0xff] }
 0x1fd   : > { %1143 = vmatprep.mubr.f32.mxu1 %v914_v4  ;;  %1586 = vst [vmem:[#allocation10 + $0xf8] sm:$0xff] %v2422_v3  ;;  %v1523_v4 = vld [vmem:[#allocation2 + $0xb0] sm:$0xff] }
 0x1fe   : > { %1064 = vmatmul.mubr.f32.gmra.mxu0 %v881_v5  ;;  %v1524_v5 = vld [vmem:[#allocation2] sm:$0xff]  ;;  %1555 = vst [vmem:[#allocation10] sm:$0xff] %v1523_v4  ;;  %v852_v4 = vld [vmem:[#allocation3 + $0x70] sm:$0xff] }
 0x1ff   : > { %1068 = vmatprep.mubr.f32.mxu0 %v884_v6  ;;  %v1525_v6 = vld [vmem:[#allocation2 + $0xd8] sm:$0xff]  ;;  %1556 = vst [vmem:[#allocation10 + $0x8] sm:$0xff] %v1524_v5 }
 0x200   : > { %1144 = vmatmul.mubr.f32.gmra.mxu1 %v913_v7  ;;  %v1526_v7 = vld [vmem:[#allocation2 + $0x18] sm:$0xff]  ;;  %1557 = vst [vmem:[#allocation10 + $0x10] sm:$0xff] %v1525_v6 }
 0x201   : > { %1148 = vmatprep.mubr.f32.mxu1 %v916_v8  ;;  %v1527_v8 = vld [vmem:[#allocation2 + $0x50] sm:$0xff]  ;;  %1558 = vst [vmem:[#allocation10 + $0x18] sm:$0xff] %v1526_v7 }
 0x202   : > { %1069 = vmatmul.mubr.f32.gmra.mxu0 %v883_v9  ;;  %v1528_v9 = vld [vmem:[#allocation2 + $0x68] sm:$0xff]  ;;  %1559 = vst [vmem:[#allocation10 + $0x20] sm:$0xff] %v1527_v8  ;;  %v1290_v8 = vld [vmem:[#allocation4 + $0xb8] sm:$0xff] }
 0x203   : > { %1073 = vmatprep.mubr.f32.mxu0 %v886_v45  ;;  %v1529_v45 = vld [vmem:[#allocation2 + $0x30] sm:$0xff]  ;;  %1560 = vst [vmem:[#allocation10 + $0x28] sm:$0xff] %v1528_v9 }
 0x204   : > { %1149 = vmatmul.mubr.f32.gmra.mxu1 %v915_v10  ;;  %v1530_v10 = vld [vmem:[#allocation2 + $0x48] sm:$0xff]  ;;  %1561 = vst [vmem:[#allocation10 + $0x30] sm:$0xff] %v1529_v45 }
 0x205   : > { %1153 = vmatprep.mubr.f32.mxu1 %v918_v11  ;;  %v1531_v11 = vld [vmem:[#allocation2 + $0x80] sm:$0xff]  ;;  %1562 = vst [vmem:[#allocation10 + $0x38] sm:$0xff] %v1530_v10  ;;  %v837_v45 = vld [vmem:[#allocation3 + $0xe8] sm:$0xff] }
 0x206   : > { %1074 = vmatmul.mubr.f32.gmra.mxu0 %v885_v22  ;;  %v1532_v22 = vld [vmem:[#allocation2 + $0x88] sm:$0xff]  ;;  %1563 = vst [vmem:[#allocation10 + $0x40] sm:$0xff] %v1531_v11 }
 0x207   : > { %1078 = vmatprep.mubr.f32.mxu0 %v888_v23  ;;  %v1533_v23 = vld [vmem:[#allocation2 + $0xe8] sm:$0xff]  ;;  %1564 = vst [vmem:[#allocation10 + $0x48] sm:$0xff] %v1532_v22 }
 0x208   : > { %1154 = vmatmul.mubr.f32.gmra.mxu1 %v917_v24  ;;  %v1534_v24 = vld [vmem:[#allocation2 + $0xb8] sm:$0xff]  ;;  %1565 = vst [vmem:[#allocation10 + $0x50] sm:$0xff] %v1533_v23 }
 0x209   : > { %1158 = vmatprep.mubr.f32.mxu1 %v920_v25  ;;  %v1535_v25 = vld [vmem:[#allocation2 + $0x60] sm:$0xff]  ;;  %1566 = vst [vmem:[#allocation10 + $0x58] sm:$0xff] %v1534_v24  ;;  %v1306_v24 = vld [vmem:[#allocation4 + $0x18] sm:$0xff] }
 0x20a   : > { %1079 = vmatmul.mubr.f32.gmra.mxu0 %v887_v26  ;;  %v1539_v26 = vld [vmem:[#allocation2 + $0x38] sm:$0xff]  ;;  %1567 = vst [vmem:[#allocation10 + $0x60] sm:$0xff] %v1535_v25 }
 0x20b   : > { %1083 = vmatprep.mubr.f32.mxu0 %v890_v27  ;;  %v1540_v27 = vld [vmem:[#allocation2 + $0x58] sm:$0xff]  ;;  %1571 = vst [vmem:[#allocation10 + $0x80] sm:$0xff] %v1539_v26  ;;  %v853_v26 = vld [vmem:[#allocation3 + $0x50] sm:$0xff] }
 0x20c   : > { %1159 = vmatmul.mubr.f32.gmra.mxu1 %v919_v28  ;;  %v1541_v28 = vld [vmem:[#allocation2 + $0x40] sm:$0xff]  ;;  %1572 = vst [vmem:[#allocation10 + $0x88] sm:$0xff] %v1540_v27 }
 0x20d   : > { %1163 = vmatprep.mubr.f32.mxu1 %v922_v29  ;;  %v1542_v29 = vld [vmem:[#allocation2 + $0xc8] sm:$0xff]  ;;  %1573 = vst [vmem:[#allocation10 + $0x90] sm:$0xff] %v1541_v28 }
 0x20e   : > { %1084 = vmatmul.mubr.f32.gmra.mxu0 %v889_v39  ;;  %v1543_v39 = vld [vmem:[#allocation2 + $0xe0] sm:$0xff]  ;;  %1574 = vst [vmem:[#allocation10 + $0x98] sm:$0xff] %v1542_v29 }
 0x20f   : > { %1088 = vmatprep.mubr.f32.mxu0 %v892_v40  ;;  %v1544_v40 = vld [vmem:[#allocation2 + $0x90] sm:$0xff]  ;;  %1575 = vst [vmem:[#allocation10 + $0xa0] sm:$0xff] %v1543_v39  ;;  %v1291_v29 = vld [vmem:[#allocation4 + $0xc0] sm:$0xff] }
 0x210   : > { %1164 = vmatmul.mubr.f32.gmra.mxu1 %v921_v41  ;;  %v1545_v41 = vld [vmem:[#allocation2 + $0x70] sm:$0xff]  ;;  %1576 = vst [vmem:[#allocation10 + $0xa8] sm:$0xff] %v1544_v40  ;;  %v838_v40 = vld [vmem:[#allocation3 + $0x78] sm:$0xff] }
 0x211   : > { %1168 = vmatprep.mubr.f32.mxu1 %v924_v42  ;;  %v1546_v42 = vld [vmem:[#allocation2 + $0xc0] sm:$0xff]  ;;  %1577 = vst [vmem:[#allocation10 + $0xb0] sm:$0xff] %v1545_v41 }
 0x212   : > { %1089 = vmatmul.mubr.f32.gmra.mxu0 %v891_v43  ;;  %v1547_v43 = vld [vmem:[#allocation2 + $0xa8] sm:$0xff]  ;;  %1578 = vst [vmem:[#allocation10 + $0xb8] sm:$0xff] %v1546_v42 }
 0x213   : > { %1093 = vmatprep.mubr.f32.mxu0 %v894_v44  ;;  %1579 = vst [vmem:[#allocation10 + $0xc0] sm:$0xff] %v1547_v43  ;;  %v835_v44 = vld [vmem:[#allocation3 + $0x80] sm:$0xff] }
 0x214   : > { %1169 = vmatmul.mubr.f32.gmra.mxu1 %v923_v46 }
 0x215   : > { %1173 = vmatprep.mubr.f32.mxu1 %v926_v47  ;;  %v851_v47 = vld [vmem:[#allocation3 + $0x10] sm:$0xff] }
 0x216   : > { %1094 = vmatmul.mubr.f32.gmra.mxu0 %v893_v48 }
 0x217   : > { %1098 = vmatprep.mubr.f32.mxu0 %v896_v49  ;;  %v1289_v49 = vld [vmem:[#allocation4 + $0xb0] sm:$0xff] }
 0x218   : > { %1174 = vmatmul.mubr.f32.gmra.mxu1 %v925_v50 }
 0x219   : > { %1178 = vmatprep.mubr.f32.mxu1 %v928_v51  ;;  %v836_v51 = vld [vmem:[#allocation3 + $0xc8] sm:$0xff] }
 0x21a   : > { %1099 = vmatmul.mubr.f32.gmra.mxu0 %v895_v52 }
 0x21b   : > { %1103 = vmatprep.mubr.f32.mxu0 %v898_v53 }
 0x21c   : > { %1179 = vmatmul.mubr.f32.gmra.mxu1 %v927_v54 }
 0x21d   : > { %1183 = vmatprep.mubr.f32.mxu1 %v930_v55 }
 0x21e   : > { %1104 = vmatmul.mubr.f32.gmra.mxu0 %v897_v56  ;;  %v1305_v56 = vld [vmem:[#allocation4 + $0xa0] sm:$0xff] }
 0x220   : > { %1184 = vmatmul.mubr.f32.gmra.mxu1 %v929_v57 }
 0x2a2   : > { %v1030_v46 = vpop.f32.mrf.mxu0 }
 0x2a3   : > { %v1189_v48 = vadd.f32 %v1030_v46, %v835_v44  ;;  %v1307_v46 = vld [vmem:[#allocation4 + $0xf8] sm:$0xff] }
 0x2a4   : > { %v1032_v50 = vpop.f32.mrf.mxu0  ;;  %v1110_v52 = vpop.f32.mrf.mxu1 }
 0x2a5   : > { %1221 = vst [vmem:[#allocation3 + $0x80] sm:$0xff] %v1189_v48  ;;  %v1353_v53 = vmul.f32 %v1189_v48, %v2318_v21  ;;  %v1205_v54 = vadd.f32 %v1110_v52, %v851_v47  ;;  %v854_v48 = vld [vmem:[#allocation3 + $0xa0] sm:$0xff] }
 0x2a6   : > { %v1035_v55 = vpop.f32.mrf.mxu0  ;;  %v1112_v57 = vpop.f32.mrf.mxu1 }
 0x2a7   : > { %v2426_v5 = vadd.f32 %v1353_v53, %v1289_v49  ;;  %v1190_v6 = vadd.f32 %v1035_v55, %v836_v51  ;;  %1237 = vst [vmem:[#allocation3 + $0x10] sm:$0xff] %v1205_v54  ;;  %v1369_v7 = vmul.f32 %v1205_v54, %v2385_v38  ;;  %v1292_v51 = vld [vmem:[#allocation4 + $0x10] sm:$0xff]  ;;  %v839_v53 = vld [vmem:[#allocation3 + $0x8] sm:$0xff] }
 0x2a8   : > { %v1037_v9 = vpop.f32.mrf.mxu0  ;;  %v1115_v10 = vpop.f32.mrf.mxu1 }
 0x2a9   : > { %1417 = vst [vmem:[#allocation4 + $0xb0] sm:$0xff] %v2426_v5  ;;  %1222 = vst [vmem:[#allocation3 + $0xc8] sm:$0xff] %v1190_v6  ;;  %v1354_v21 = vmul.f32 %v1190_v6, %v2312_v20  ;;  %v2431_v11 = vadd.f32 %v1369_v7, %v1305_v56  ;;  %v1206_v22 = vadd.f32 %v1115_v10, %v852_v4  ;;  %v1308_v4 = vld [vmem:[#allocation4 + $0xe8] sm:$0xff]  ;;  %v855_v7 = vld [vmem:[#allocation3 + $0xd8] sm:$0xff] }
 0x2aa   : > { %v1040_v23 = vpop.f32.mrf.mxu0  ;;  %v1117_v25 = vpop.f32.mrf.mxu1 }
 0x2ab   : > { %v2433_v27 = vadd.f32 %v1354_v21, %v1290_v8  ;;  %v1191_v28 = vadd.f32 %v1040_v23, %v837_v45  ;;  %1433 = vst [vmem:[#allocation4 + $0xa0] sm:$0xff] %v2431_v11  ;;  %1238 = vst [vmem:[#allocation3 + $0x70] sm:$0xff] %v1206_v22  ;;  %v1370_v38 = vmul.f32 %v1206_v22, %v2379_v37  ;;  %v1293_v45 = vld [vmem:[#allocation4 + $0x28] sm:$0xff]  ;;  %v840_v21 = vld [vmem:[#allocation3 + $0x90] sm:$0xff] }
 0x2ac   : > { %v1042_v39 = vpop.f32.mrf.mxu0  ;;  %v1120_v41 = vpop.f32.mrf.mxu1 }
 0x2ad   : > { %1418 = vst [vmem:[#allocation4 + $0xb8] sm:$0xff] %v2433_v27  ;;  %1223 = vst [vmem:[#allocation3 + $0xe8] sm:$0xff] %v1191_v28  ;;  %v1355_v20 = vmul.f32 %v1191_v28, %v2306_v19  ;;  %v2439_v42 = vadd.f32 %v1370_v38, %v1306_v24  ;;  %v1207_v43 = vadd.f32 %v1120_v41, %v853_v26  ;;  %v1309_v26 = vld [vmem:[#allocation4 + $0x90] sm:$0xff] }
 0x2ae   : > { %v1045_v44 = vpop.f32.mrf.mxu0  ;;  %v1122_v47 = vpop.f32.mrf.mxu1  ;;  %v856_v38 = vld [vmem:[#allocation3 + $0x30] sm:$0xff] }
 0x2af   : > { %v2441_v49 = vadd.f32 %v1355_v20, %v1291_v29  ;;  %v1192_v50 = vadd.f32 %v1045_v44, %v838_v40  ;;  %1434 = vst [vmem:[#allocation4 + $0x18] sm:$0xff] %v2439_v42  ;;  %1239 = vst [vmem:[#allocation3 + $0x50] sm:$0xff] %v1207_v43  ;;  %v1371_v37 = vmul.f32 %v1207_v43, %v2373_v36  ;;  %v1294_v40 = vld [vmem:[#allocation4 + $0x30] sm:$0xff]  ;;  %v841_v20 = vld [vmem:[#allocation3 + $0x58] sm:$0xff] }
 0x2b0   : > { %v1047_v52 = vpop.f32.mrf.mxu0  ;;  %v1125_v54 = vpop.f32.mrf.mxu1 }
 0x2b1   : > { %1419 = vst [vmem:[#allocation4 + $0xc0] sm:$0xff] %v2441_v49  ;;  %1224 = vst [vmem:[#allocation3 + $0x78] sm:$0xff] %v1192_v50  ;;  %v1356_v19 = vmul.f32 %v1192_v50, %v2300_v18  ;;  %v2447_v55 = vadd.f32 %v1371_v37, %v1307_v46  ;;  %v1208_v56 = vadd.f32 %v1125_v54, %v854_v48  ;;  %v1310_v48 = vld [vmem:[#allocation4 + $0x20] sm:$0xff] }
 0x2b2   : > { %v1050_v57 = vpop.f32.mrf.mxu0  ;;  %v1127_v6 = vpop.f32.mrf.mxu1  ;;  %v857_v37 = vld [vmem:[#allocation3 + $0x20] sm:$0xff] }
 0x2b3   : > { %v2449_v8 = vadd.f32 %v1356_v19, %v1292_v51  ;;  %v1193_v9 = vadd.f32 %v1050_v57, %v839_v53  ;;  %1435 = vst [vmem:[#allocation4 + $0xf8] sm:$0xff] %v2447_v55  ;;  %1240 = vst [vmem:[#allocation3 + $0xa0] sm:$0xff] %v1208_v56  ;;  %v1372_v36 = vmul.f32 %v1208_v56, %v2367_v35  ;;  %v1295_v53 = vld [vmem:[#allocation4 + $0xd0] sm:$0xff]  ;;  %v842_v19 = vld [vmem:[#allocation3 + $0xa8] sm:$0xff] }
 0x2b4   : > { %v1052_v10 = vpop.f32.mrf.mxu0  ;;  %v1130_v22 = vpop.f32.mrf.mxu1 }
 0x2b5   : > { %1420 = vst [vmem:[#allocation4 + $0x10] sm:$0xff] %v2449_v8  ;;  %1225 = vst [vmem:[#allocation3 + $0x8] sm:$0xff] %v1193_v9  ;;  %v1357_v18 = vmul.f32 %v1193_v9, %v2294_v17  ;;  %v2455_v23 = vadd.f32 %v1372_v36, %v1308_v4  ;;  %v1209_v24 = vadd.f32 %v1130_v22, %v855_v7  ;;  %v1311_v7 = vld [vmem:[#allocation4 + $0x38] sm:$0xff]  ;;  %v858_v36 = vld [vmem:[#allocation3 + $0xf0] sm:$0xff] }
 0x2b6   : > { %v1055_v25 = vpop.f32.mrf.mxu0  ;;  %v1132_v28 = vpop.f32.mrf.mxu1 }
 0x2b7   : > { %v2457_v29 = vadd.f32 %v1357_v18, %v1293_v45  ;;  %v1194_v39 = vadd.f32 %v1055_v25, %v840_v21  ;;  %1436 = vst [vmem:[#allocation4 + $0xe8] sm:$0xff] %v2455_v23  ;;  %1241 = vst [vmem:[#allocation3 + $0xd8] sm:$0xff] %v1209_v24  ;;  %v1373_v35 = vmul.f32 %v1209_v24, %v2361_v34  ;;  %v1296_v21 = vld [vmem:[#allocation4 + $0x68] sm:$0xff]  ;;  %v843_v18 = vld [vmem:[#allocation3 + $0xd0] sm:$0xff] }
 0x2b8   : > { %v1057_v41 = vpop.f32.mrf.mxu0  ;;  %v1135_v43 = vpop.f32.mrf.mxu1 }
 0x2b9   : > { %1421 = vst [vmem:[#allocation4 + $0x28] sm:$0xff] %v2457_v29  ;;  %1226 = vst [vmem:[#allocation3 + $0x90] sm:$0xff] %v1194_v39  ;;  %v1358_v17 = vmul.f32 %v1194_v39, %v2288_v16  ;;  %v2463_v44 = vadd.f32 %v1373_v35, %v1309_v26  ;;  %v1210_v46 = vadd.f32 %v1135_v43, %v856_v38  ;;  %v1312_v38 = vld [vmem:[#allocation4 + $0x70] sm:$0xff]  ;;  %v859_v35 = vld [vmem:[#allocation3 + $0x88] sm:$0xff] }
 0x2ba   : > { %v1060_v47 = vpop.f32.mrf.mxu0  ;;  %v1137_v50 = vpop.f32.mrf.mxu1 }
 0x2bb   : > { %v2465_v51 = vadd.f32 %v1358_v17, %v1294_v40  ;;  %v1195_v52 = vadd.f32 %v1060_v47, %v841_v20  ;;  %1437 = vst [vmem:[#allocation4 + $0x90] sm:$0xff] %v2463_v44  ;;  %1242 = vst [vmem:[#allocation3 + $0x30] sm:$0xff] %v1210_v46  ;;  %v1374_v34 = vmul.f32 %v1210_v46, %v2355_v33  ;;  %v1297_v20 = vld [vmem:[#allocation4 + $0x58] sm:$0xff]  ;;  %v844_v17 = vld [vmem:[#allocation3 + $0xb0] sm:$0xff] }
 0x2bc   : > { %v1062_v54 = vpop.f32.mrf.mxu0  ;;  %v1140_v56 = vpop.f32.mrf.mxu1 }
 0x2bd   : > { %1422 = vst [vmem:[#allocation4 + $0x30] sm:$0xff] %v2465_v51  ;;  %1227 = vst [vmem:[#allocation3 + $0x58] sm:$0xff] %v1195_v52  ;;  %v1359_v16 = vmul.f32 %v1195_v52, %v2282_v15  ;;  %v2471_v57 = vadd.f32 %v1374_v34, %v1310_v48  ;;  %v1211_v4 = vadd.f32 %v1140_v56, %v857_v37  ;;  %v1313_v37 = vld [vmem:[#allocation4 + $0xa8] sm:$0xff] }
 0x2be   : > { %v1065_v6 = vpop.f32.mrf.mxu0  ;;  %v1142_v9 = vpop.f32.mrf.mxu1  ;;  %v860_v34 = vld [vmem:[#allocation3 + $0x48] sm:$0xff] }
 0x2bf   : > { %v2473_v45 = vadd.f32 %v1359_v16, %v1295_v53  ;;  %v1196_v10 = vadd.f32 %v1065_v6, %v842_v19  ;;  %1438 = vst [vmem:[#allocation4 + $0x20] sm:$0xff] %v2471_v57  ;;  %1243 = vst [vmem:[#allocation3 + $0x20] sm:$0xff] %v1211_v4  ;;  %v1375_v33 = vmul.f32 %v1211_v4, %v2349_v32  ;;  %v1298_v19 = vld [vmem:[#allocation4] sm:$0xff]  ;;  %v845_v16 = vld [vmem:[#allocation3 + $0x38] sm:$0xff] }
 0x2c0   : > { %v1067_v22 = vpop.f32.mrf.mxu0  ;;  %v1145_v24 = vpop.f32.mrf.mxu1 }
 0x2c1   : > { %1423 = vst [vmem:[#allocation4 + $0xd0] sm:$0xff] %v2473_v45  ;;  %1228 = vst [vmem:[#allocation3 + $0xa8] sm:$0xff] %v1196_v10  ;;  %v1360_v15 = vmul.f32 %v1196_v10, %v2276_v14  ;;  %v2479_v25 = vadd.f32 %v1375_v33, %v1311_v7  ;;  %v1212_v26 = vadd.f32 %v1145_v24, %v858_v36  ;;  %v1314_v10 = vld [vmem:[#allocation4 + $0xf0] sm:$0xff] }
 0x2c2   : > { %v1070_v28 = vpop.f32.mrf.mxu0  ;;  %v1147_v39 = vpop.f32.mrf.mxu1 }
 0x2c3   : > { %v2481_v40 = vadd.f32 %v1360_v15, %v1296_v21  ;;  %v1197_v41 = vadd.f32 %v1070_v28, %v843_v18  ;;  %1439 = vst [vmem:[#allocation4 + $0x38] sm:$0xff] %v2479_v25  ;;  %1244 = vst [vmem:[#allocation3 + $0xf0] sm:$0xff] %v1212_v26  ;;  %v1376_v32 = vmul.f32 %v1212_v26, %v2344_v31  ;;  %v861_v21 = vld [vmem:[#allocation3 + $0xf8] sm:$0xff]  ;;  %v1909_v28 = vld [vmem:[#allocation2 + $0xe8] sm:$0xff] }
 0x2c4   : > { %v1072_v43 = vpop.f32.mrf.mxu0  ;;  %v1150_v46 = vpop.f32.mrf.mxu1 }
 0x2c5   : > { %1424 = vst [vmem:[#allocation4 + $0x68] sm:$0xff] %v2481_v40  ;;  %1229 = vst [vmem:[#allocation3 + $0xd0] sm:$0xff] %v1197_v41  ;;  %v1361_v14 = vmul.f32 %v1197_v41, %v2270_v13  ;;  %v2487_v47 = vadd.f32 %v1376_v32, %v1312_v38  ;;  %v1213_v48 = vadd.f32 %v1150_v46, %v859_v35  ;;  %v1315_v41 = vld [vmem:[#allocation4 + $0x50] sm:$0xff]  ;;  %v1300_v46 = vld [vmem:[#allocation4 + $0x40] sm:$0xff] }
 0x2c6   : > { %v1075_v50 = vpop.f32.mrf.mxu0  ;;  %v1152_v52 = vpop.f32.mrf.mxu1  ;;  %v1484_v13 = vadd.f32 %v2433_v27, %v2426_v5  ;;  %v1299_v27 = vld [vmem:[#allocation4 + $0x48] sm:$0xff] }
 0x2c7   : > { %v2489_v53 = vadd.f32 %v1361_v14, %v1297_v20  ;;  %v1198_v54 = vadd.f32 %v1075_v50, %v844_v17  ;;  %1440 = vst [vmem:[#allocation4 + $0x70] sm:$0xff] %v2487_v47  ;;  %1245 = vst [vmem:[#allocation3 + $0x88] sm:$0xff] %v1213_v48  ;;  %v1377_v31 = vmul.f32 %v1213_v48, %v2340_v30  ;;  %v862_v20 = vld [vmem:[#allocation3 + $0xc0] sm:$0xff]  ;;  %v1910_v52 = vld [vmem:[#allocation2 + $0xb8] sm:$0xff] }
 0x2c8   : > { %v1077_v56 = vpop.f32.mrf.mxu0  ;;  %v1155_v4 = vpop.f32.mrf.mxu1  ;;  %v1485_v30 = vadd.f32 %v1484_v13, %v2441_v49  ;;  %v847_v48 = vld [vmem:[#allocation3 + $0xe0] sm:$0xff] }
 0x2c9   : > { %1425 = vst [vmem:[#allocation4 + $0x58] sm:$0xff] %v2489_v53  ;;  %1230 = vst [vmem:[#allocation3 + $0xb0] sm:$0xff] %v1198_v54  ;;  %v1362_v6 = vmul.f32 %v1198_v54, %v2266_v12  ;;  %v2497_v7 = vadd.f32 %v1377_v31, %v1313_v37  ;;  %v1214_v9 = vadd.f32 %v1155_v4, %v860_v34  ;;  %v846_v12 = vld [vmem:[#allocation3 + $0x40] sm:$0xff] }
 0x2ca   : > { %v1080_v36 = vpop.f32.mrf.mxu0  ;;  %v1157_v33 = vpop.f32.mrf.mxu1  ;;  %v1486_v26 = vadd.f32 %v1485_v30, %v2449_v8 }
 0x2cb   : > { %v2500_v22 = vadd.f32 %v1362_v6, %v1298_v19  ;;  %v1199_v18 = vadd.f32 %v1080_v36, %v845_v16  ;;  %1441 = vst [vmem:[#allocation4 + $0xa8] sm:$0xff] %v2497_v7  ;;  %1246 = vst [vmem:[#allocation3 + $0x48] sm:$0xff] %v1214_v9  ;;  %v1378_v5 = vmul.f32 %v2404_v61, %v1214_v9  ;;  %v1316_v19 = vld [vmem:[#allocation4 + $0x88] sm:$0xff]  ;;  %v863_v16 = vld [vmem:[#allocation3 + $0xb8] sm:$0xff] }
 0x2cc   : > { %v1082_v24 = vpop.f32.mrf.mxu0  ;;  %v1160_v15 = vpop.f32.mrf.mxu1  ;;  %v1487_v61 = vadd.f32 %v1486_v26, %v2457_v29  ;;  %v1301_v6 = vld [vmem:[#allocation4 + $0x78] sm:$0xff]  ;;  %v848_v36 = vld [vmem:[#allocation3 + $0x60] sm:$0xff] }
 0x2cd   : > { %1426 = vst [vmem:[#allocation4] sm:$0xff] %v2500_v22  ;;  %1231 = vst [vmem:[#allocation3 + $0x38] sm:$0xff] %v1199_v18  ;;  %v1363_v38 = vmul.f32 %v1909_v28, %v1199_v18  ;;  %v2506_v49 = vadd.f32 %v1378_v5, %v1314_v10  ;;  %v1215_v39 = vadd.f32 %v1160_v15, %v861_v21  ;;  %v1911_v21 = vld [vmem:[#allocation2 + $0x60] sm:$0xff]  ;;  %v1302_v28 = vld [vmem:[#allocation4 + $0xd8] sm:$0xff] }
 0x2ce   : > { %v1085_v35 = vpop.f32.mrf.mxu0  ;;  %v1162_v32 = vpop.f32.mrf.mxu1  ;;  %v1488_v37 = vadd.f32 %v1487_v61, %v2465_v51 }
 0x2cf   : > { %v1395_v43 = vadd.f32 %v1363_v38, %v1299_v27  ;;  %v1200_v17 = vadd.f32 %v1085_v35, %v846_v12  ;;  %1442 = vst [vmem:[#allocation4 + $0xf0] sm:$0xff] %v2506_v49  ;;  %1247 = vst [vmem:[#allocation3 + $0xf8] sm:$0xff] %v1215_v39  ;;  %v1379_v8 = vmul.f32 %v2407_v62, %v1215_v39  ;;  %v1317_v27 = vld [vmem:[#allocation4 + $0xc8] sm:$0xff]  ;;  %v864_v12 = vld [vmem:[#allocation3] sm:$0xff] }
 0x2d0   : > { %v1087_v14 = vpop.f32.mrf.mxu0  ;;  %v1165_v50 = vpop.f32.mrf.mxu1  ;;  %v1489_v4 = vadd.f32 %v1488_v37, %v2473_v45  ;;  %v849_v39 = vld [vmem:[#allocation3 + $0x18] sm:$0xff] }
 0x2d1   : > { %1427 = vst [vmem:[#allocation4 + $0x48] sm:$0xff] %v1395_v43  ;;  %1232 = vst [vmem:[#allocation3 + $0x40] sm:$0xff] %v1200_v17  ;;  %v1364_v34 = vmul.f32 %v1910_v52, %v1200_v17  ;;  %v2512_v54 = vadd.f32 %v1379_v8, %v1315_v41  ;;  %v1216_v29 = vadd.f32 %v1165_v50, %v862_v20  ;;  %v1318_v17 = vld [vmem:[#allocation4 + $0x98] sm:$0xff]  ;;  %v850_v52 = vld [vmem:[#allocation3 + $0x68] sm:$0xff] }
 0x2d2   : > { %v1090_v31 = vpop.f32.mrf.mxu0  ;;  %v1167_v56 = vpop.f32.mrf.mxu1  ;;  %v1490_v33 = vadd.f32 %v1489_v4, %v2481_v40  ;;  %v866_v4 = vld [vmem:[#allocation3 + $0x98] sm:$0xff] }
 0x2d3   : > { %v1396_v62 = vadd.f32 %v1364_v34, %v1300_v46  ;;  %v1201_v13 = vadd.f32 %v1090_v31, %v847_v48  ;;  %1443 = vst [vmem:[#allocation4 + $0x50] sm:$0xff] %v2512_v54  ;;  %1248 = vst [vmem:[#allocation3 + $0xc0] sm:$0xff] %v1216_v29  ;;  %v1380_v51 = vmul.f32 %v2410_v63, %v1216_v29  ;;  %v865_v46 = vld [vmem:[#allocation3 + $0x28] sm:$0xff] }
 0x2d4   : > { %v1092_v9 = vpop.f32.mrf.mxu0  ;;  %v1170_v10 = vpop.f32.mrf.mxu1  ;;  %v1491_v15 = vadd.f32 %v1490_v33, %v2489_v53 }
 0x2d5   : > { %1428 = vst [vmem:[#allocation4 + $0x40] sm:$0xff] %v1396_v62  ;;  %1233 = vst [vmem:[#allocation3 + $0xe0] sm:$0xff] %v1201_v13  ;;  %v1365_v30 = vmul.f32 %v1911_v21, %v1201_v13  ;;  %v2518_v18 = vadd.f32 %v1380_v51, %v1316_v19  ;;  %v1217_v45 = vadd.f32 %v1170_v10, %v863_v16  ;;  %v1304_v9 = vld [vmem:[#allocation4 + $0x80] sm:$0xff] }
 0x2d6   : > { %v1095_v5 = vpop.f32.mrf.mxu0  ;;  %v1172_v24 = vpop.f32.mrf.mxu1  ;;  %v1492_v41 = vadd.f32 %v1491_v15, %v2500_v22  ;;  %v1303_v22 = vld [vmem:[#allocation4 + $0xe0] sm:$0xff] }
 0x2d7   : > { %v1397_v63 = vadd.f32 %v1365_v30, %v1301_v6  ;;  %v1202_v26 = vadd.f32 %v1095_v5, %v848_v36  ;;  %1444 = vst [vmem:[#allocation4 + $0x88] sm:$0xff] %v2518_v18  ;;  %1249 = vst [vmem:[#allocation3 + $0xb8] sm:$0xff] %v1217_v45  ;;  %v1381_v40 = vmul.f32 %v2413_v0, %v1217_v45  ;;  %v1320_v30 = vld [vmem:[#allocation4 + $0x8] sm:$0xff] }
 0x2d8   : > { %v1097_v38 = vpop.f32.mrf.mxu0  ;;  %v1175_v35 = vpop.f32.mrf.mxu1  ;;  %v1493_v14 = vadd.f32 %v1492_v41, %v1395_v43  ;;  %v1319_v43 = vld [vmem:[#allocation4 + $0x60] sm:$0xff] }
 0x2d9   : > { %1429 = vst [vmem:[#allocation4 + $0x78] sm:$0xff] %v1397_v63  ;;  %1234 = vst [vmem:[#allocation3 + $0x60] sm:$0xff] %v1202_v26  ;;  %v1366_v32 = vmul.f32 %v2395_v58, %v1202_v26  ;;  %v2525_v20 = vadd.f32 %v1381_v40, %v1317_v27  ;;  %v1218_v53 = vadd.f32 %v1175_v35, %v864_v12 }
 0x2da   : > { %v1100_v61 = vpop.f32.mrf.mxu0  ;;  %v1177_v8 = vpop.f32.mrf.mxu1  ;;  %v1494_v58 = vadd.f32 %v1493_v14, %v1396_v62 }
 0x2db   : > { %v1398_v48 = vadd.f32 %v1366_v32, %v1302_v28  ;;  %v1203_v0 = vadd.f32 %v1100_v61, %v849_v39  ;;  %1445 = vst [vmem:[#allocation4 + $0xc8] sm:$0xff] %v2525_v20  ;;  %1250 = vst [vmem:[#allocation3] sm:$0xff] %v1218_v53  ;;  %v1382_v50 = vmul.f32 %v2416_v1, %v1218_v53 }
 0x2dc   : > { %v1102_v37 = vpop.f32.mrf.mxu0  ;;  %v1180_v34 = vpop.f32.mrf.mxu1  ;;  %v1495_v13 = vadd.f32 %v1494_v58, %v1397_v63 }
 0x2dd   : > { %1430 = vst [vmem:[#allocation4 + $0xd8] sm:$0xff] %v1398_v48  ;;  %1235 = vst [vmem:[#allocation3 + $0x18] sm:$0xff] %v1203_v0  ;;  %v1367_v29 = vmul.f32 %v2398_v59, %v1203_v0  ;;  %v1414_v31 = vadd.f32 %v1382_v50, %v1318_v17  ;;  %v1219_v19 = vadd.f32 %v1180_v34, %v865_v46 }
 0x2de   : > { %v1105_v56 = vpop.f32.mrf.mxu0  ;;  %v1182_v16 = vpop.f32.mrf.mxu1  ;;  %v1496_v10 = vadd.f32 %v1495_v13, %v1398_v48 }
 0x2df   : > { %v1399_v51 = vadd.f32 %v1367_v29, %v1303_v22  ;;  %v1204_v6 = vadd.f32 %v1105_v56, %v850_v52  ;;  %1446 = vst [vmem:[#allocation4 + $0x98] sm:$0xff] %v1414_v31  ;;  %1251 = vst [vmem:[#allocation3 + $0x28] sm:$0xff] %v1219_v19  ;;  %v1383_v1 = vmul.f32 %v2419_v2, %v1219_v19 }
 0x2e0   : > { %v1107_v36 = vpop.f32.mrf.mxu0  ;;  %v1185_v62 = vpop.f32.mrf.mxu1 }
 0x2e1   : > { %1431 = vst [vmem:[#allocation4 + $0xe0] sm:$0xff] %v1399_v51  ;;  %1236 = vst [vmem:[#allocation3 + $0x68] sm:$0xff] %v1204_v6  ;;  %v1368_v59 = vmul.f32 %v2401_v60, %v1204_v6  ;;  %v1415_v33 = vadd.f32 %v1383_v1, %v1319_v43  ;;  %v1220_v21 = vadd.f32 %v1185_v62, %v866_v4 }
 0x2e2   : > { %v1187_v45 = vpop.f32.mrf.mxu1  ;;  %v1497_v5 = vadd.f32 %v1496_v10, %v1399_v51 }
 0x2e3   : > { %v1400_v27 = vadd.f32 %v1368_v59, %v1304_v9  ;;  %1447 = vst [vmem:[#allocation4 + $0x60] sm:$0xff] %v1415_v33  ;;  %1252 = vst [vmem:[#allocation3 + $0x98] sm:$0xff] %v1220_v21  ;;  %v1384_v24 = vmul.f32 %v2422_v3, %v1220_v21 }
 0x2e5   : > { %1432 = vst [vmem:[#allocation4 + $0x80] sm:$0xff] %v1400_v27  ;;  %v1498_v2 = vadd.f32 %v1497_v5, %v1400_v27  ;;  %v1416_v12 = vadd.f32 %v1384_v24, %v1320_v30 }
 0x2e7   : > { %v1499_v15 = vadd.f32 %v1498_v2, %v2431_v11  ;;  %1448 = vst [vmem:[#allocation4 + $0x8] sm:$0xff] %v1416_v12 }
 0x2e9   : > { %v1500_v63 = vadd.f32 %v1499_v15, %v2439_v42 }
 0x2eb   : > { %v1501_v60 = vadd.f32 %v1500_v63, %v2447_v55 }
 0x2ed   : > { %v1502_v26 = vadd.f32 %v1501_v60, %v2455_v23 }
 0x2ef   : > { %v1503_v40 = vadd.f32 %v1502_v26, %v2463_v44 }
 0x2f1   : > { %v1504_v28 = vadd.f32 %v1503_v40, %v2471_v57 }
 0x2f3   : > { %v1505_v38 = vadd.f32 %v1504_v28, %v2479_v25 }
 0x2f5   : > { %v1506_v3 = vadd.f32 %v1505_v38, %v2487_v47 }
 0x2f7   : > { %v1507_v39 = vadd.f32 %v1506_v3, %v2497_v7 }
 0x2f9   : > { %v1508_v35 = vadd.f32 %v1507_v39, %v2506_v49 }
 0x2fb   : > { %v1509_v11 = vadd.f32 %v1508_v35, %v2512_v54 }
 0x2fd   : > { %v1510_v42 = vadd.f32 %v1509_v11, %v2518_v18 }
 0x2ff   : > { %v1511_v55 = vadd.f32 %v1510_v42, %v2525_v20 }
 0x301   : > { %v1512_v41 = vadd.f32 %v1511_v55, %v1414_v31 }
 0x303   : > { %v1513_v23 = vadd.f32 %v1512_v41, %v1415_v33 }
 0x305   : > { %v1514_v32 = vadd.f32 %v1513_v23, %v1416_v12 }
 0x307   : > { %v1515_v44 = vrot.slane %v1514_v32, 4 }
 0x309   : > { %v1516_v53 = vadd.f32 %v1515_v44, %v1514_v32 }
 0x30b   : > { %v1517_v57 = vrot.slane %v1516_v53, 2 }
 0x30d   : > { %v1518_v61 = vadd.f32 %v1517_v57, %v1516_v53 }
 0x30f   : > { %v1519_v25 = vrot.slane %v1518_v61, 1 }
 0x311   : > { %v1520_v17 = vadd.f32 %v1519_v25, %v1518_v61 }
 0x313   : > { %v1521_v47 = vmul.f32 -0.5, %v1520_v17 }
 0x315   : > { %1522 = vst [vmem:[#allocation11] sm:$0x1] %v1521_v47 }
 0x316 PF: > { %p2548_p6 = scmp.eq.s32.totalorder %s1692_s15, 1  ;;  %s2063_s8 = smov [#allocation10]  }
 0x317   : > { %s1593_s9 = sshll.u32 %s2063_s8, 4  ;;  %s1594_s9 = int_to_ptr.vmem [resolvable:$true] %s1593_s9 }
 0x318   : > { %s1964_s10 = scalar_lea.vmem %s1594_s9, 4096  ;;  %p1971_p1 = scmp.lt.s32.totalorder %s1594_s9, %s1594_s9 }
 0x319   : > { %p1965_p12 = scmp.ne.s32.totalorder %s1594_s9, %s1964_s10  ;;  %p1972_p2 = scmp.lt.s32.totalorder %s1964_s10, %s1964_s10 }
 0x31b   : > { %p1966_p13 = pnand %p1965_p12, %p2548_p6  ;;  %p1973_p5 = por %p1972_p2, %p1971_p1 }
 0x31d   : > { %p1967_p0 = pneg %p1966_p13 }
 0x31f   : > { %p1974_p8 = pnand %p1973_p5, %p1967_p0 }
 0x321   : > { %1977 = shalt.err (!%p1974_p8)
}
 0x322   : > { %s2064_s11 = smov 128   ;;  %s2065_s12 = smov 8  }
 0x323   : > { %1848 = dma.vmem_to_hbm [thread:$0]  (%p2548_p6), %s1594_s9, 4096, %s2585_s2, [#allocation7], %s2064_s11, %s2064_s11, %s2065_s12  }
 0x324   : > { %s2066_s18 = smov [#allocation11]  }
 0x325   : > { %s1607_s19 = sshll.u32 %s2066_s18, 4  ;;  %s1608_s19 = int_to_ptr.vmem [resolvable:$true] %s1607_s19 }
 0x326   : > { %s1988_s20 = scalar_lea.vmem %s1608_s19, 16  ;;  %s1994_s21 = scalar_lea.vmem %s1608_s19, 32 }
 0x327   : > { %p1989_p9 = scmp.ne.s32.totalorder %s1608_s19, %s1988_s20  ;;  %p1995_p7 = scmp.lt.s32.totalorder %s1608_s19, %s1608_s19 }
 0x328   : > { %p1996_p3 = scmp.lt.s32.totalorder %s1994_s21, %s1988_s20 }
 0x329   : > { %p1990_p11 = pnand %p1989_p9, %p2548_p6 }
 0x32a   : > { %p1997_p4 = por %p1996_p3, %p1995_p7 }
 0x32b   : > { %p1991_p10 = pneg %p1990_p11 }
 0x32d   : > { %p1998_p12 = pnand %p1997_p4, %p1991_p10 }
 0x32f   : > { %2001 = shalt.err (!%p1998_p12)
}
 0x330   : > { %1850 = dma.vmem_to_hbm [thread:$0]  (%p2548_p6), %s1608_s19, 16, %s2586_s3, [#allocation12]  }
 0x331   : > { %2033 = dma.done.wait (%p2548_p6), [#allocation7], 4096  }
 0x332   : > { %2035 = vsyncadd (%p2548_p6), [#allocation7], 4294963200 }
 0x333   : > { %2037 = dma.done.wait (%p2548_p6), [#allocation12], 16  }
 0x334   : > { %2039 = vsyncadd (%p2548_p6), [#allocation12], 4294967280 }
 0x335 PF: > { %s18_s14 = sadd.s32 1, %s2050_s14   ;;  %s2591_s12 = smov %s2046_s13 }
 0x336   : > { %p15_p13 = scmp.ge.s32.totalorder %s18_s14, 4   ;;  %s2592_s13 = smov %s2594_s16 }
 0x338   :  { %17 = sbr.rel (!%p15_p13) target bundleno = 5 (0x5), region = 102 }
 0x33d   :  { %1624 = vsyncpa [#allocation6], 1 }
 0x33e   :  { %1626 = vsyncpa [#allocation6 + $0x1], 1 }
 0x33f   :  { %1627 = vsyncpa [#allocation9], 1 }
 0x340   :  { %1628 = vsyncpa [#allocation7], 1 }
 0x341   :  { %1630 = vsyncpa [#allocation7 + $0x1], 1 }
 0x342   :  { %1631 = vsyncpa [#allocation12], 1 }

</bundles_post_ra>
